<compile_context>
chip_gen: v7x
topology: tpu7x:2x2x1
jax: 0.10.0
libtpu: 0.0.40
codegen_flags: <defaults>
</compile_context>

<pallas_src>
import functools

import jax
import jax.numpy as jnp
from jax import lax
from jax.experimental import pallas as pl
from jax.experimental.pallas import tpu as pltpu

EPS = 1e-5
LANE = 128  # lane width; channels are padded to a multiple of this

try:  # size VMEM budgets from the actual part; conservative fallback otherwise
    _VMEM_CAP = int(pltpu.get_tpu_info().vmem_capacity_bytes)
except Exception:  # pragma: no cover
    _VMEM_CAP = 64 * 1024 * 1024


def _round_up(x, m):
    return (x + m - 1) // m * m


def _band_vmem_bytes(R, W, cin, cout, d, in_itemsize, out_itemsize):
    """Rough per-step VMEM footprint of one row band (scratch + pipelined blocks)."""
    rb, wp = R + 2 * d, W + 2 * d
    band = rb * wp * cin * in_itemsize       # DMA staging buffer
    act = rb * wp * cin * 2                  # bf16 activation scratch
    y = 2 * R * W * cout * out_itemsize      # double-buffered output block
    acc = 2 * R * W * cout * 4               # f32 accumulator + compiler slack
    w = 2 * 9 * cin * cout * 2               # bf16 weights (conservatively x2)
    return band + act + y + acc + w


def _pick_band_rows(H, W, cin, cout, d, in_itemsize, out_itemsize, budget):
    """Largest divisor of H whose band footprint stays under `budget`."""
    best = 1
    for r in range(1, H + 1):
        if H % r == 0 and _band_vmem_bytes(r, W, cin, cout, d,
                                           in_itemsize, out_itemsize) <= budget:
            best = r
    return best


def _bn_relu_conv_kernel(x_hbm, scale_ref, bias_ref, w_ref, cb_ref, y_ref, *rest,
                         R, W, Cin, Cout, d, compute_stats):
    """One (image, row-band) step:
       y = dilated_conv3x3(relu(scale*x + bias)) + conv_bias
    plus (optionally) per-band channel sum / sum-of-squares of y for the next BN.

    x_hbm:     (N, H+2d, W+2d, Cin)  spatially padded input, left in HBM (pl.ANY)
    scale_ref: (1, Cin)              folded BN scale (gamma / sqrt(var+eps))
    bias_ref:  (1, Cin)              folded BN shift (beta - mean*scale)
    w_ref:     (9, Cin, Cout) bf16   per-tap conv weights (t = kh*3 + kw)
    cb_ref:    (1, Cout)             conv bias
    y_ref:     (1, R, W, Cout)       output band
    stats_ref: (1, 1, 2, Cout)       [channel sum; channel sum of squares] (optional)
    band_ref:  VMEM (1, R+2d, W+2d, Cin)   DMA staging buffer (input dtype)
    act_ref:   VMEM (R+2d, W+2d, Cin) bf16 halo-padded activation scratch
    """
    if compute_stats:
        stats_ref, band_ref, act_ref, dma_sem = rest
    else:
        stats_ref = None
        band_ref, act_ref, dma_sem = rest

    f32 = jnp.float32
    bf16 = jnp.bfloat16
    rb, wp = R + 2 * d, W + 2 * d
    n = pl.program_id(0)
    b = pl.program_id(1)
    nb = pl.num_programs(1)

    # Manual DMA of this band's rows (+2d halo) from the spatially padded HBM input.
    cp = pltpu.make_async_copy(
        x_hbm.at[pl.ds(n, 1), pl.ds(b * R, rb), :, :], band_ref, dma_sem)
    cp.start()
    cp.wait()

    # Folded BN affine + ReLU (elementwise math in f32), staged to VMEM as bf16.
    band = band_ref[0].astype(f32)                                  # (rb, wp, Cin)
    act = jnp.maximum(band * scale_ref[...] + bias_ref[...], 0.0)
    act_ref[...] = act.astype(bf16)

    # The conv's zero padding must be zero AFTER the affine+ReLU (relu(bias) != 0),
    # so re-zero the halo pieces that fall outside the image.  Halo rows shared with
    # neighbouring bands are real activations and are kept.
    zcol = jnp.zeros((rb, d, Cin), bf16)
    act_ref[:, 0:d, :] = zcol
    act_ref[:, W + d:wp, :] = zcol
    zrow = jnp.zeros((d, wp, Cin), bf16)

    @pl.when(b == 0)
    def _():
        act_ref[0:d, :, :] = zrow

    @pl.when(b == nb - 1)
    def _():
        act_ref[R + d:rb, :, :] = zrow

    # 9 accumulating per-tap matmuls (K = Cin each, bf16 in / f32 MXU accumulation);
    # the partial sum stays in registers, no im2col slab is materialized.
    acc = None
    for kh in range(3):
        for kw in range(3):
            lhs = act_ref[kh * d:kh * d + R, kw * d:kw * d + W, :]
            lhs = lhs.reshape(R * W, Cin)
            part = jnp.dot(lhs, w_ref[kh * 3 + kw],
                           preferred_element_type=jnp.float32)
            acc = part if acc is None else acc + part

    out = acc + cb_ref[...]                                         # (R*W, Cout) f32
    y_ref[...] = out.reshape(1, R, W, Cout).astype(y_ref.dtype)

    if compute_stats:
        # Per-band channel statistics for the next layer's BatchNorm, from the f32
        # pre-cast conv output; single store.
        s1 = jnp.sum(out, axis=0, keepdims=True)                    # (1, Cout)
        s2 = jnp.sum(out * out, axis=0, keepdims=True)              # (1, Cout)
        stats_ref[...] = jnp.concatenate([s1, s2], axis=0).reshape(1, 1, 2, Cout)


def bn_relu_conv(x_pad, scale, bias, w9, conv_bias, *, d, out_dtype=jnp.float32,
                 compute_stats=True, band_rows=None):
    """Fused per-channel affine + ReLU + dilated 3x3 conv (stride 1, padding d).

    x_pad is NHWC, spatially padded by d on each side, channels padded to LANE.
    Returns y (and per-band stats if compute_stats).
    """
    assert d >= 1, "Block requires dilation/padding d >= 1"
    N, Hp, Wp, Cp_in = x_pad.shape
    H, W = Hp - 2 * d, Wp - 2 * d
    Cp_out = w9.shape[-1]
    in_bytes = jnp.dtype(x_pad.dtype).itemsize
    out_bytes = jnp.dtype(out_dtype).itemsize

    if band_rows is None:
        band_rows = _pick_band_rows(H, W, Cp_in, Cp_out, d, in_bytes, out_bytes,
                                    budget=_VMEM_CAP // 4)
    R = band_rows
    assert H % R == 0, (H, R)
    NB = H // R
    rb = R + 2 * d

    est = _band_vmem_bytes(R, W, Cp_in, Cp_out, d, in_bytes, out_bytes)
    vmem_limit = int(min(max(32 * 1024 * 1024, 2 * est),
                         _VMEM_CAP - 8 * 1024 * 1024))

    kernel = functools.partial(_bn_relu_conv_kernel, R=R, W=W, Cin=Cp_in,
                               Cout=Cp_out, d=d, compute_stats=compute_stats)

    out_shape = [jax.ShapeDtypeStruct((N, H, W, Cp_out), out_dtype)]
    out_specs = [pl.BlockSpec((1, R, W, Cp_out), lambda n, b: (n, b, 0, 0))]
    if compute_stats:
        out_shape.append(jax.ShapeDtypeStruct((N, NB, 2, Cp_out), jnp.float32))
        out_specs.append(pl.BlockSpec((1, 1, 2, Cp_out), lambda n, b: (n, b, 0, 0)))

    res = pl.pallas_call(
        kernel,
        out_shape=tuple(out_shape),
        grid_spec=pltpu.PrefetchScalarGridSpec(
            num_scalar_prefetch=0,
            grid=(N, NB),                       # (image, row-band); both independent
            in_specs=[
                pl.BlockSpec(memory_space=pl.ANY),              # padded input in HBM
                pl.BlockSpec((1, Cp_in), lambda n, b: (0, 0)),
                pl.BlockSpec((1, Cp_in), lambda n, b: (0, 0)),
                pl.BlockSpec((9, Cp_in, Cp_out), lambda n, b: (0, 0, 0)),
                pl.BlockSpec((1, Cp_out), lambda n, b: (0, 0)),
            ],
            out_specs=tuple(out_specs),
            scratch_shapes=[
                pltpu.VMEM((1, rb, W + 2 * d, Cp_in), x_pad.dtype),   # band staging
                pltpu.VMEM((rb, W + 2 * d, Cp_in), jnp.bfloat16),     # bf16 activations
                pltpu.SemaphoreType.DMA,
            ],
        ),
        compiler_params=pltpu.CompilerParams(
            dimension_semantics=("parallel", "parallel"),
            vmem_limit_bytes=vmem_limit,
        ),
    )(x_pad, scale, bias, w9, conv_bias)

    if compute_stats:
        return res
    return res[0]


def _pad_vec(v, n):
    return jnp.pad(v, (0, n - v.shape[0])).astype(jnp.float32)


def _pack_weight(w_oihw, cin_p, cout_p):
    """OIHW conv weight -> (9, cin_p, cout_p) bf16 per-tap slabs (t = kh*3 + kw)."""
    o, i, kh, kw = w_oihw.shape
    w = jnp.transpose(w_oihw, (2, 3, 1, 0))                  # HWIO
    w = jnp.pad(w, ((0, 0), (0, 0), (0, cin_p - i), (0, cout_p - o)))
    return w.reshape(kh * kw, cin_p, cout_p).astype(jnp.bfloat16)


def block_forward(x_nchw, p, d, band_rows=None):
    """Pallas implementation of Block.forward (input/output in NCHW like PyTorch)."""
    assert d >= 1, "Block requires dilation d >= 1"
    N, Cin, H, W = x_nchw.shape
    Cout = p["w1"].shape[0]
    Cp_in = _round_up(Cin, LANE)
    Cp_out = _round_up(Cout, LANE)
    cnt = float(N * H * W)

    x = jnp.transpose(x_nchw, (0, 2, 3, 1))                  # NCHW -> NHWC

    # --- BN1 (training-mode batch stats of the block input), folded to scale/shift ---
    mean1 = jnp.mean(x, axis=(0, 1, 2))
    var1 = jnp.var(x, axis=(0, 1, 2))                        # biased, as in PyTorch fwd
    scale1 = p["gamma1"] * lax.rsqrt(var1 + EPS)
    bias1 = p["beta1"] - mean1 * scale1

    # Spatial pad by d (halo source rows; values are re-zeroed in-kernel after the
    # affine) + channel pad to lane width.
    x_p = jnp.pad(x, ((0, 0), (d, d), (d, d), (0, Cp_in - Cin)))
    w1 = _pack_weight(p["w1"], Cp_in, Cp_out)
    y1, stats1 = bn_relu_conv(
        x_p,
        _pad_vec(scale1, Cp_in).reshape(1, Cp_in),
        _pad_vec(bias1, Cp_in).reshape(1, Cp_in),
        w1,
        _pad_vec(p["cb1"], Cp_out).reshape(1, Cp_out),
        d=d, out_dtype=jnp.bfloat16, compute_stats=True, band_rows=band_rows)

    # --- BN2 from the in-kernel per-band sums (no HBM re-read of y1) ---
    # Padded output channels stay exactly zero: gamma2/conv-bias are zero-padded AND
    # conv2's weight rows for those input channels are zero (defense in depth).
    tot = jnp.sum(stats1, axis=(0, 1))                       # (2, Cp_out) f32
    mean2 = tot[0] / cnt
    var2 = jnp.maximum(tot[1] / cnt - mean2 * mean2, 0.0)    # clamp single-pass var
    scale2 = _pad_vec(p["gamma2"], Cp_out) * lax.rsqrt(var2 + EPS)
    bias2 = _pad_vec(p["beta2"], Cp_out) - mean2 * scale2

    y1_p = jnp.pad(y1, ((0, 0), (d, d), (d, d), (0, 0)))     # bf16 intermediate
    w2 = _pack_weight(p["w2"], Cp_out, Cp_out)
    y2 = bn_relu_conv(
        y1_p,
        scale2.reshape(1, Cp_out),
        bias2.reshape(1, Cp_out),
        w2,
        _pad_vec(p["cb2"], Cp_out).reshape(1, Cp_out),
        d=d, out_dtype=jnp.float32, compute_stats=False, band_rows=band_rows)

    y2 = y2[..., :Cout]                                      # drop channel padding
    return jnp.transpose(y2, (0, 3, 1, 2))                   # NHWC -> NCHW


def ref_forward(x_nchw, p, d):
    """Pure-JAX f32 reference (same math) for the correctness check."""
    x = jnp.transpose(x_nchw, (0, 2, 3, 1))

    def bn_relu(y, gamma, beta):
        mean = jnp.mean(y, axis=(0, 1, 2))
        var = jnp.var(y, axis=(0, 1, 2))
        return jnp.maximum((y - mean) * lax.rsqrt(var + EPS) * gamma + beta, 0.0)

    def conv(y, w_oihw, b):
        w = jnp.transpose(w_oihw, (2, 3, 1, 0))
        out = lax.conv_general_dilated(
            y, w, window_strides=(1, 1), padding=((d, d), (d, d)),
            rhs_dilation=(d, d), dimension_numbers=("NHWC", "HWIO", "NHWC"))
        return out + b

    y1 = conv(bn_relu(x, p["gamma1"], p["beta1"]), p["w1"], p["cb1"])
    y2 = conv(bn_relu(y1, p["gamma2"], p["beta2"]), p["w2"], p["cb2"])
    return jnp.transpose(y2, (0, 3, 1, 2))


def init_params(key, in_ch, out_ch):
    ks = jax.random.split(key, 8)
    f32 = jnp.float32
    return {
        "gamma1": 1.0 + 0.1 * jax.random.normal(ks[0], (in_ch,), f32),
        "beta1": 0.1 * jax.random.normal(ks[1], (in_ch,), f32),
        "w1": 0.1 * jax.random.normal(ks[2], (out_ch, in_ch, 3, 3), f32),   # OIHW
        "cb1": 0.1 * jax.random.normal(ks[3], (out_ch,), f32),
        "gamma2": 1.0 + 0.1 * jax.random.normal(ks[4], (out_ch,), f32),
        "beta2": 0.1 * jax.random.normal(ks[5], (out_ch,), f32),
        "w2": 0.1 * jax.random.normal(ks[6], (out_ch, out_ch, 3, 3), f32),  # OIHW
        "cb2": 0.1 * jax.random.normal(ks[7], (out_ch,), f32),
    }


if __name__ == "__main__":
    key = jax.random.PRNGKey(0)
    kx, kp = jax.random.split(key)

    in_ch, out_ch, d = 4, 8, 2
    N, H, W = 2, 16, 16

    x = jax.random.normal(kx, (N, in_ch, H, W), jnp.float32)   # NCHW like PyTorch
    params = init_params(kp, in_ch, out_ch)

    # band_rows=8 -> 2 row bands per image, exercising the halo / band-edge handling.
    out = jax.block_until_ready(block_forward(x, params, d, band_rows=8))
    ref = jax.block_until_ready(ref_forward(x, params, d))

    assert out.shape == (N, out_ch, H, W), out.shape
    # bf16 MXU inputs + bf16 y1 intermediate (f32 accumulation) -> loosened tolerance
    # vs the pure-f32 reference.
    err = float(jnp.max(jnp.abs(out - ref)))
    assert jnp.allclose(out, ref, atol=5e-2, rtol=5e-2), err

    print("KERNEL_OK")
</pallas_src>

<mosaic_0001>
module attributes {stable_mosaic.version = 11 : i64} {
  func.func @_bn_relu_conv_kernel(%arg0: i32, %arg1: i32, %arg2: memref<2x20x20x128xf32, #tpu.memory_space<any>>, %arg3: memref<1x128xf32, #tpu.memory_space<vmem>>, %arg4: memref<1x128xf32, #tpu.memory_space<vmem>>, %arg5: memref<9x128x128xbf16, #tpu.memory_space<vmem>>, %arg6: memref<1x128xf32, #tpu.memory_space<vmem>>, %arg7: memref<1x8x16x128xbf16, #tpu.memory_space<vmem>>, %arg8: memref<1x1x2x128xf32, #tpu.memory_space<vmem>>, %arg9: memref<1x12x20x128xf32, #tpu.memory_space<vmem>>, %arg10: memref<12x20x128xbf16, #tpu.memory_space<vmem>>, %arg11: memref<!tpu.dma_semaphore, #tpu.memory_space<semaphore_mem>>) attributes {dimension_semantics = [#tpu.dimension_semantics<parallel>, #tpu.dimension_semantics<parallel>], iteration_bounds = array<i64: 2, 2>, scalar_prefetch = 0 : i64, scratch_operands = 3 : i64, tpu.core_type = #tpu.core_type<tc>, window_params = [{}, {pipeline_mode = #tpu.pipeline_mode<synchronous>, transform_indices = @transform_1, window_bounds = array<i64: 1, 128>}, {pipeline_mode = #tpu.pipeline_mode<synchronous>, transform_indices = @transform_2, window_bounds = array<i64: 1, 128>}, {pipeline_mode = #tpu.pipeline_mode<synchronous>, transform_indices = @transform_3, window_bounds = array<i64: 9, 128, 128>}, {pipeline_mode = #tpu.pipeline_mode<synchronous>, transform_indices = @transform_4, window_bounds = array<i64: 1, 128>}, {transform_indices = @transform_5, window_bounds = array<i64: 1, 8, 16, 128>}, {transform_indices = @transform_6, window_bounds = array<i64: 1, 1, 2, 128>}]} {
    %c8_i32 = arith.constant 8 : i32
    %0 = arith.muli %arg1, %c8_i32 : i32
    %c0_i32 = arith.constant 0 : i32
    %c0_i32_0 = arith.constant 0 : i32
    %1 = tpu.memref_slice %arg2[%arg0, %0, %c0_i32, %c0_i32_0] : memref<2x20x20x128xf32, #tpu.memory_space<any>> -> memref<1x12x20x128xf32, #tpu.memory_space<any>>
    tpu.enqueue_dma source(%1 : memref<1x12x20x128xf32, #tpu.memory_space<any>>) target(%arg9 : memref<1x12x20x128xf32, #tpu.memory_space<vmem>>) target_semaphore(%arg11 : memref<!tpu.dma_semaphore, #tpu.memory_space<semaphore_mem>>)
    %c0_i32_1 = arith.constant 0 : i32
    %c0_i32_2 = arith.constant 0 : i32
    %2 = tpu.memref_slice %arg2[%arg0, %0, %c0_i32_1, %c0_i32_2] : memref<2x20x20x128xf32, #tpu.memory_space<any>> -> memref<1x12x20x128xf32, #tpu.memory_space<any>>
    tpu.wait_dma2 semaphore(%arg11 : memref<!tpu.dma_semaphore, #tpu.memory_space<semaphore_mem>>) src(%2 : memref<1x12x20x128xf32, #tpu.memory_space<any>>) dst(%arg9 : memref<1x12x20x128xf32, #tpu.memory_space<vmem>>)
    %c0 = arith.constant 0 : index
    %c0_3 = arith.constant 0 : index
    %c0_4 = arith.constant 0 : index
    %c0_5 = arith.constant 0 : index
    %3 = vector.load %arg9[%c0, %c0_3, %c0_4, %c0_5] : memref<1x12x20x128xf32, #tpu.memory_space<vmem>>, vector<1x12x20x128xf32>
    %4 = vector.shape_cast %3 : vector<1x12x20x128xf32> to vector<12x20x128xf32>
    %c0_6 = arith.constant 0 : index
    %c0_7 = arith.constant 0 : index
    %5 = vector.load %arg3[%c0_6, %c0_7] : memref<1x128xf32, #tpu.memory_space<vmem>>, vector<1x128xf32>
    %6 = vector.shape_cast %5 : vector<1x128xf32> to vector<1x1x128xf32>
    %7 = vector.broadcast %6 : vector<1x1x128xf32> to vector<12x20x128xf32>
    %8 = arith.mulf %4, %7 : vector<12x20x128xf32>
    %c0_8 = arith.constant 0 : index
    %c0_9 = arith.constant 0 : index
    %9 = vector.load %arg4[%c0_8, %c0_9] : memref<1x128xf32, #tpu.memory_space<vmem>>, vector<1x128xf32>
    %10 = vector.shape_cast %9 : vector<1x128xf32> to vector<1x1x128xf32>
    %11 = vector.broadcast %10 : vector<1x1x128xf32> to vector<12x20x128xf32>
    %12 = arith.addf %8, %11 : vector<12x20x128xf32>
    %cst = arith.constant 0.000000e+00 : f32
    %13 = vector.broadcast %cst : f32 to vector<12x20x128xf32>
    %14 = arith.maximumf %12, %13 : vector<12x20x128xf32>
    %15 = arith.truncf %14 : vector<12x20x128xf32> to vector<12x20x128xbf16>
    %c0_10 = arith.constant 0 : index
    %c0_11 = arith.constant 0 : index
    %c0_12 = arith.constant 0 : index
    %16 = vector.load %arg10[%c0_10, %c0_11, %c0_12] : memref<12x20x128xbf16, #tpu.memory_space<vmem>>, vector<12x20x128xbf16>
    tpu.vector_store %arg10[%c0_10, %c0_11, %c0_12], %15 {strides = array<i32>} : memref<12x20x128xbf16, #tpu.memory_space<vmem>>, vector<12x20x128xbf16>,
    %cst_13 = arith.constant 0.000000e+00 : bf16
    %17 = vector.broadcast %cst_13 : bf16 to vector<12x2x128xbf16>
    %c0_14 = arith.constant 0 : index
    %c0_15 = arith.constant 0 : index
    %c0_16 = arith.constant 0 : index
    %18 = vector.load %arg10[%c0_14, %c0_15, %c0_16] : memref<12x20x128xbf16, #tpu.memory_space<vmem>>, vector<12x2x128xbf16>
    tpu.vector_store %arg10[%c0_14, %c0_15, %c0_16], %17 {strides = array<i32>} : memref<12x20x128xbf16, #tpu.memory_space<vmem>>, vector<12x2x128xbf16>,
    %c0_17 = arith.constant 0 : index
    %c18 = arith.constant 18 : index
    %c0_18 = arith.constant 0 : index
    %19 = vector.load %arg10[%c0_17, %c18, %c0_18] : memref<12x20x128xbf16, #tpu.memory_space<vmem>>, vector<12x2x128xbf16>
    tpu.vector_store %arg10[%c0_17, %c18, %c0_18], %17 {strides = array<i32>} : memref<12x20x128xbf16, #tpu.memory_space<vmem>>, vector<12x2x128xbf16>,
    %cst_19 = arith.constant 0.000000e+00 : bf16
    %20 = vector.broadcast %cst_19 : bf16 to vector<2x20x128xbf16>
    %c0_i32_20 = arith.constant 0 : i32
    %21 = arith.cmpi eq, %arg1, %c0_i32_20 : i32
    %22 = arith.extui %21 : i1 to i32
    %c0_i32_21 = arith.constant 0 : i32
    %23 = arith.cmpi ne, %22, %c0_i32_21 : i32
    scf.if %23 {
      %c0_90 = arith.constant 0 : index
      %c0_91 = arith.constant 0 : index
      %c0_92 = arith.constant 0 : index
      %94 = vector.load %arg10[%c0_90, %c0_91, %c0_92] : memref<12x20x128xbf16, #tpu.memory_space<vmem>>, vector<2x20x128xbf16>
      tpu.vector_store %arg10[%c0_90, %c0_91, %c0_92], %20 {strides = array<i32>} : memref<12x20x128xbf16, #tpu.memory_space<vmem>>, vector<2x20x128xbf16>,
    } else {
    }
    %c1_i32 = arith.constant 1 : i32
    %24 = arith.cmpi eq, %arg1, %c1_i32 : i32
    %25 = arith.extui %24 : i1 to i32
    %c0_i32_22 = arith.constant 0 : i32
    %26 = arith.cmpi ne, %25, %c0_i32_22 : i32
    scf.if %26 {
      %c10 = arith.constant 10 : index
      %c0_90 = arith.constant 0 : index
      %c0_91 = arith.constant 0 : index
      %94 = vector.load %arg10[%c10, %c0_90, %c0_91] : memref<12x20x128xbf16, #tpu.memory_space<vmem>>, vector<2x20x128xbf16>
      tpu.vector_store %arg10[%c10, %c0_90, %c0_91], %20 {strides = array<i32>} : memref<12x20x128xbf16, #tpu.memory_space<vmem>>, vector<2x20x128xbf16>,
    } else {
    }
    %c0_23 = arith.constant 0 : index
    %c0_24 = arith.constant 0 : index
    %c0_25 = arith.constant 0 : index
    %27 = vector.load %arg10[%c0_23, %c0_24, %c0_25] : memref<12x20x128xbf16, #tpu.memory_space<vmem>>, vector<8x16x128xbf16>
    %28 = vector.shape_cast %27 : vector<8x16x128xbf16> to vector<128x128xbf16>
    %c0_26 = arith.constant 0 : index
    %c0_27 = arith.constant 0 : index
    %c0_28 = arith.constant 0 : index
    %29 = vector.load %arg5[%c0_26, %c0_27, %c0_28] : memref<9x128x128xbf16, #tpu.memory_space<vmem>>, vector<1x128x128xbf16>
    %30 = vector.shape_cast %29 : vector<1x128x128xbf16> to vector<128x128xbf16>
    %cst_29 = arith.constant dense<0.000000e+00> : vector<128x128xf32>
    %31 = tpu.matmul %28, %30, %cst_29 {dimension_numbers = #tpu.dot_dimension_numbers<[1], [0], [0], [1], [0, 0, 1, 1], [], []>} : vector<128x128xbf16>, vector<128x128xbf16>, vector<128x128xf32> -> vector<128x128xf32>
    %c0_30 = arith.constant 0 : index
    %c2 = arith.constant 2 : index
    %c0_31 = arith.constant 0 : index
    %32 = vector.load %arg10[%c0_30, %c2, %c0_31] : memref<12x20x128xbf16, #tpu.memory_space<vmem>>, vector<8x16x128xbf16>
    %33 = vector.shape_cast %32 : vector<8x16x128xbf16> to vector<128x128xbf16>
    %c1 = arith.constant 1 : index
    %c0_32 = arith.constant 0 : index
    %c0_33 = arith.constant 0 : index
    %34 = vector.load %arg5[%c1, %c0_32, %c0_33] : memref<9x128x128xbf16, #tpu.memory_space<vmem>>, vector<1x128x128xbf16>
    %35 = vector.shape_cast %34 : vector<1x128x128xbf16> to vector<128x128xbf16>
    %cst_34 = arith.constant dense<0.000000e+00> : vector<128x128xf32>
    %36 = tpu.matmul %33, %35, %cst_34 {dimension_numbers = #tpu.dot_dimension_numbers<[1], [0], [0], [1], [0, 0, 1, 1], [], []>} : vector<128x128xbf16>, vector<128x128xbf16>, vector<128x128xf32> -> vector<128x128xf32>
    %37 = arith.addf %31, %36 : vector<128x128xf32>
    %c0_35 = arith.constant 0 : index
    %c4 = arith.constant 4 : index
    %c0_36 = arith.constant 0 : index
    %38 = vector.load %arg10[%c0_35, %c4, %c0_36] : memref<12x20x128xbf16, #tpu.memory_space<vmem>>, vector<8x16x128xbf16>
    %39 = vector.shape_cast %38 : vector<8x16x128xbf16> to vector<128x128xbf16>
    %c2_37 = arith.constant 2 : index
    %c0_38 = arith.constant 0 : index
    %c0_39 = arith.constant 0 : index
    %40 = vector.load %arg5[%c2_37, %c0_38, %c0_39] : memref<9x128x128xbf16, #tpu.memory_space<vmem>>, vector<1x128x128xbf16>
    %41 = vector.shape_cast %40 : vector<1x128x128xbf16> to vector<128x128xbf16>
    %cst_40 = arith.constant dense<0.000000e+00> : vector<128x128xf32>
    %42 = tpu.matmul %39, %41, %cst_40 {dimension_numbers = #tpu.dot_dimension_numbers<[1], [0], [0], [1], [0, 0, 1, 1], [], []>} : vector<128x128xbf16>, vector<128x128xbf16>, vector<128x128xf32> -> vector<128x128xf32>
    %43 = arith.addf %37, %42 : vector<128x128xf32>
    %c2_41 = arith.constant 2 : index
    %c0_42 = arith.constant 0 : index
    %c0_43 = arith.constant 0 : index
    %44 = vector.load %arg10[%c2_41, %c0_42, %c0_43] : memref<12x20x128xbf16, #tpu.memory_space<vmem>>, vector<8x16x128xbf16>
    %45 = vector.shape_cast %44 : vector<8x16x128xbf16> to vector<128x128xbf16>
    %c3 = arith.constant 3 : index
    %c0_44 = arith.constant 0 : index
    %c0_45 = arith.constant 0 : index
    %46 = vector.load %arg5[%c3, %c0_44, %c0_45] : memref<9x128x128xbf16, #tpu.memory_space<vmem>>, vector<1x128x128xbf16>
    %47 = vector.shape_cast %46 : vector<1x128x128xbf16> to vector<128x128xbf16>
    %cst_46 = arith.constant dense<0.000000e+00> : vector<128x128xf32>
    %48 = tpu.matmul %45, %47, %cst_46 {dimension_numbers = #tpu.dot_dimension_numbers<[1], [0], [0], [1], [0, 0, 1, 1], [], []>} : vector<128x128xbf16>, vector<128x128xbf16>, vector<128x128xf32> -> vector<128x128xf32>
    %49 = arith.addf %43, %48 : vector<128x128xf32>
    %c2_47 = arith.constant 2 : index
    %c2_48 = arith.constant 2 : index
    %c0_49 = arith.constant 0 : index
    %50 = vector.load %arg10[%c2_47, %c2_48, %c0_49] : memref<12x20x128xbf16, #tpu.memory_space<vmem>>, vector<8x16x128xbf16>
    %51 = vector.shape_cast %50 : vector<8x16x128xbf16> to vector<128x128xbf16>
    %c4_50 = arith.constant 4 : index
    %c0_51 = arith.constant 0 : index
    %c0_52 = arith.constant 0 : index
    %52 = vector.load %arg5[%c4_50, %c0_51, %c0_52] : memref<9x128x128xbf16, #tpu.memory_space<vmem>>, vector<1x128x128xbf16>
    %53 = vector.shape_cast %52 : vector<1x128x128xbf16> to vector<128x128xbf16>
    %cst_53 = arith.constant dense<0.000000e+00> : vector<128x128xf32>
    %54 = tpu.matmul %51, %53, %cst_53 {dimension_numbers = #tpu.dot_dimension_numbers<[1], [0], [0], [1], [0, 0, 1, 1], [], []>} : vector<128x128xbf16>, vector<128x128xbf16>, vector<128x128xf32> -> vector<128x128xf32>
    %55 = arith.addf %49, %54 : vector<128x128xf32>
    %c2_54 = arith.constant 2 : index
    %c4_55 = arith.constant 4 : index
    %c0_56 = arith.constant 0 : index
    %56 = vector.load %arg10[%c2_54, %c4_55, %c0_56] : memref<12x20x128xbf16, #tpu.memory_space<vmem>>, vector<8x16x128xbf16>
    %57 = vector.shape_cast %56 : vector<8x16x128xbf16> to vector<128x128xbf16>
    %c5 = arith.constant 5 : index
    %c0_57 = arith.constant 0 : index
    %c0_58 = arith.constant 0 : index
    %58 = vector.load %arg5[%c5, %c0_57, %c0_58] : memref<9x128x128xbf16, #tpu.memory_space<vmem>>, vector<1x128x128xbf16>
    %59 = vector.shape_cast %58 : vector<1x128x128xbf16> to vector<128x128xbf16>
    %cst_59 = arith.constant dense<0.000000e+00> : vector<128x128xf32>
    %60 = tpu.matmul %57, %59, %cst_59 {dimension_numbers = #tpu.dot_dimension_numbers<[1], [0], [0], [1], [0, 0, 1, 1], [], []>} : vector<128x128xbf16>, vector<128x128xbf16>, vector<128x128xf32> -> vector<128x128xf32>
    %61 = arith.addf %55, %60 : vector<128x128xf32>
    %c4_60 = arith.constant 4 : index
    %c0_61 = arith.constant 0 : index
    %c0_62 = arith.constant 0 : index
    %62 = vector.load %arg10[%c4_60, %c0_61, %c0_62] : memref<12x20x128xbf16, #tpu.memory_space<vmem>>, vector<8x16x128xbf16>
    %63 = vector.shape_cast %62 : vector<8x16x128xbf16> to vector<128x128xbf16>
    %c6 = arith.constant 6 : index
    %c0_63 = arith.constant 0 : index
    %c0_64 = arith.constant 0 : index
    %64 = vector.load %arg5[%c6, %c0_63, %c0_64] : memref<9x128x128xbf16, #tpu.memory_space<vmem>>, vector<1x128x128xbf16>
    %65 = vector.shape_cast %64 : vector<1x128x128xbf16> to vector<128x128xbf16>
    %cst_65 = arith.constant dense<0.000000e+00> : vector<128x128xf32>
    %66 = tpu.matmul %63, %65, %cst_65 {dimension_numbers = #tpu.dot_dimension_numbers<[1], [0], [0], [1], [0, 0, 1, 1], [], []>} : vector<128x128xbf16>, vector<128x128xbf16>, vector<128x128xf32> -> vector<128x128xf32>
    %67 = arith.addf %61, %66 : vector<128x128xf32>
    %c4_66 = arith.constant 4 : index
    %c2_67 = arith.constant 2 : index
    %c0_68 = arith.constant 0 : index
    %68 = vector.load %arg10[%c4_66, %c2_67, %c0_68] : memref<12x20x128xbf16, #tpu.memory_space<vmem>>, vector<8x16x128xbf16>
    %69 = vector.shape_cast %68 : vector<8x16x128xbf16> to vector<128x128xbf16>
    %c7 = arith.constant 7 : index
    %c0_69 = arith.constant 0 : index
    %c0_70 = arith.constant 0 : index
    %70 = vector.load %arg5[%c7, %c0_69, %c0_70] : memref<9x128x128xbf16, #tpu.memory_space<vmem>>, vector<1x128x128xbf16>
    %71 = vector.shape_cast %70 : vector<1x128x128xbf16> to vector<128x128xbf16>
    %cst_71 = arith.constant dense<0.000000e+00> : vector<128x128xf32>
    %72 = tpu.matmul %69, %71, %cst_71 {dimension_numbers = #tpu.dot_dimension_numbers<[1], [0], [0], [1], [0, 0, 1, 1], [], []>} : vector<128x128xbf16>, vector<128x128xbf16>, vector<128x128xf32> -> vector<128x128xf32>
    %73 = arith.addf %67, %72 : vector<128x128xf32>
    %c4_72 = arith.constant 4 : index
    %c4_73 = arith.constant 4 : index
    %c0_74 = arith.constant 0 : index
    %74 = vector.load %arg10[%c4_72, %c4_73, %c0_74] : memref<12x20x128xbf16, #tpu.memory_space<vmem>>, vector<8x16x128xbf16>
    %75 = vector.shape_cast %74 : vector<8x16x128xbf16> to vector<128x128xbf16>
    %c8 = arith.constant 8 : index
    %c0_75 = arith.constant 0 : index
    %c0_76 = arith.constant 0 : index
    %76 = vector.load %arg5[%c8, %c0_75, %c0_76] : memref<9x128x128xbf16, #tpu.memory_space<vmem>>, vector<1x128x128xbf16>
    %77 = vector.shape_cast %76 : vector<1x128x128xbf16> to vector<128x128xbf16>
    %cst_77 = arith.constant dense<0.000000e+00> : vector<128x128xf32>
    %78 = tpu.matmul %75, %77, %cst_77 {dimension_numbers = #tpu.dot_dimension_numbers<[1], [0], [0], [1], [0, 0, 1, 1], [], []>} : vector<128x128xbf16>, vector<128x128xbf16>, vector<128x128xf32> -> vector<128x128xf32>
    %79 = arith.addf %73, %78 : vector<128x128xf32>
    %c0_78 = arith.constant 0 : index
    %c0_79 = arith.constant 0 : index
    %80 = vector.load %arg6[%c0_78, %c0_79] : memref<1x128xf32, #tpu.memory_space<vmem>>, vector<1x128xf32>
    %81 = vector.broadcast %80 : vector<1x128xf32> to vector<128x128xf32>
    %82 = arith.addf %79, %81 : vector<128x128xf32>
    %83 = vector.shape_cast %82 : vector<128x128xf32> to vector<1x8x16x128xf32>
    %84 = arith.truncf %83 : vector<1x8x16x128xf32> to vector<1x8x16x128xbf16>
    %c0_80 = arith.constant 0 : index
    %c0_81 = arith.constant 0 : index
    %c0_82 = arith.constant 0 : index
    %c0_83 = arith.constant 0 : index
    %85 = vector.load %arg7[%c0_80, %c0_81, %c0_82, %c0_83] : memref<1x8x16x128xbf16, #tpu.memory_space<vmem>>, vector<1x8x16x128xbf16>
    tpu.vector_store %arg7[%c0_80, %c0_81, %c0_82, %c0_83], %84 {strides = array<i32>} : memref<1x8x16x128xbf16, #tpu.memory_space<vmem>>, vector<1x8x16x128xbf16>,
    %cst_84 = arith.constant dense<0.000000e+00> : vector<128xf32>
    %86 = vector.multi_reduction <add>, %82, %cst_84 [0] : vector<128x128xf32> to vector<128xf32>
    %87 = vector.shape_cast %86 : vector<128xf32> to vector<1x128xf32>
    %88 = arith.mulf %82, %82 : vector<128x128xf32>
    %cst_85 = arith.constant dense<0.000000e+00> : vector<128xf32>
    %89 = vector.multi_reduction <add>, %88, %cst_85 [0] : vector<128x128xf32> to vector<128xf32>
    %90 = vector.shape_cast %89 : vector<128xf32> to vector<1x128xf32>
    %91 = tpu.concatenate %87, %90 in 0 : vector<1x128xf32>, vector<1x128xf32> -> vector<2x128xf32>
    %92 = vector.shape_cast %91 : vector<2x128xf32> to vector<1x1x2x128xf32>
    %c0_86 = arith.constant 0 : index
    %c0_87 = arith.constant 0 : index
    %c0_88 = arith.constant 0 : index
    %c0_89 = arith.constant 0 : index
    %93 = vector.load %arg8[%c0_86, %c0_87, %c0_88, %c0_89] : memref<1x1x2x128xf32, #tpu.memory_space<vmem>>, vector<1x1x2x128xf32>
    tpu.vector_store %arg8[%c0_86, %c0_87, %c0_88, %c0_89], %92 {strides = array<i32>} : memref<1x1x2x128xf32, #tpu.memory_space<vmem>>, vector<1x1x2x128xf32>,
    return
  }
  func.func @transform_1(%arg0: i32, %arg1: i32) -> (i32, i32) {
    %c0_i32 = arith.constant 0 : i32
    %c0_i32_0 = arith.constant 0 : i32
    %c0_i32_1 = arith.constant 0 : i32
    return %c0_i32, %c0_i32_0 : i32, i32
  }
  func.func @transform_2(%arg0: i32, %arg1: i32) -> (i32, i32) {
    %c0_i32 = arith.constant 0 : i32
    %c0_i32_0 = arith.constant 0 : i32
    %c0_i32_1 = arith.constant 0 : i32
    return %c0_i32, %c0_i32_0 : i32, i32
  }
  func.func @transform_3(%arg0: i32, %arg1: i32) -> (i32, i32, i32) {
    %c0_i32 = arith.constant 0 : i32
    %c0_i32_0 = arith.constant 0 : i32
    %c0_i32_1 = arith.constant 0 : i32
    %c0_i32_2 = arith.constant 0 : i32
    return %c0_i32, %c0_i32_0, %c0_i32_1 : i32, i32, i32
  }
  func.func @transform_4(%arg0: i32, %arg1: i32) -> (i32, i32) {
    %c0_i32 = arith.constant 0 : i32
    %c0_i32_0 = arith.constant 0 : i32
    %c0_i32_1 = arith.constant 0 : i32
    return %c0_i32, %c0_i32_0 : i32, i32
  }
  func.func @transform_5(%arg0: i32, %arg1: i32) -> (i32, i32, i32, i32) {
    %c0_i32 = arith.constant 0 : i32
    %c0_i32_0 = arith.constant 0 : i32
    %c0_i32_1 = arith.constant 0 : i32
    return %arg0, %arg1, %c0_i32, %c0_i32_0 : i32, i32, i32, i32
  }
  func.func @transform_6(%arg0: i32, %arg1: i32) -> (i32, i32, i32, i32) {
    %c0_i32 = arith.constant 0 : i32
    %c0_i32_0 = arith.constant 0 : i32
    %c0_i32_1 = arith.constant 0 : i32
    return %arg0, %arg1, %c0_i32, %c0_i32_0 : i32, i32, i32, i32
  }
}

</mosaic_0001>

<bundles_post_ra>
// kernel: tpu_custom_call.1
= control target key start
LH: loop header
LB: loop body
LE: loop exit
PB: predicated region body
PF: predicated region fallthrough
CT: control target
= control target key end

     0   :  { %s6045_s0 = inlined_call_operand.vmem [shape: f32[2,20,20,128], index: 0, kind: input, shape index: {}]   ;;  %s6046_s1 = inlined_call_operand.vmem [shape: f32[1,128], index: 1, kind: input, shape index: {}]   ;;  %s6047_s2 = inlined_call_operand.vmem [shape: f32[1,128], index: 2, kind: input, shape index: {}]   ;;  %s6048_s3 = inlined_call_operand.vmem [shape: bf16[9,128,128], index: 3, kind: input, shape index: {}]   ;;  %s6049_s4 = inlined_call_operand.vmem [shape: f32[1,128], index: 4, kind: input, shape index: {}]   ;;  %s6050_s5 = inlined_call_operand.hbm [shape: bf16[2,16,16,128], index: 5, kind: output, shape index: {0}]   ;;  %s6051_s6 = inlined_call_operand.hbm [shape: f32[2,2,2,128], index: 6, kind: output, shape index: {1}]  }
   0x1   :  { %6053 = sst [smem:[#allocation14_spill]] %s6045_s0 }
   0x2   :  { %12 = vsyncpa [#allocation6], 0 }
   0x3   :  { %14 = vsyncpa [#allocation6 + $0x1], 0 }
   0x4   :  { %15 = vsyncpa [#allocation8], 0 }
   0x5   :  { %17 = vsyncpa [#allocation8 + $0x1], 0  ;;  %s5094_s21 = smov 0   ;;  %s5096_s22 = smov 0  }
   0x6   :  { %s5098_s23 = smov 0   ;;  %s5100_s24 = smov 0  }
   0x7   :  { %s5102_s25 = smov 0   ;;  %s5104_s26 = smov 0  }
   0x8   :  { %s5106_s27 = smov 0   ;;  %s5108_s28 = smov 0  }
   0x9 LB: > { %s3626_s29 = sadd.s32 4294967295, %s5050_s28   ;;  %s3627_s30 = sadd.s32 4294967294, %s5050_s28   ;;  %s5050_s28 = sphi %s5108_s28, %s23_s28   ;;  %s5046_s27 = sphi %s5106_s27, %s6070_s27   ;;  %s5042_s26 = sphi %s5104_s26, %s6069_s26   ;;  %s5038_s25 = sphi %s5102_s25, %s6068_s25   ;;  %s5034_s24 = sphi %s5100_s24, %s6067_s24   ;;  %s5030_s23 = sphi %s5098_s23, %s6066_s23   ;;  %s5026_s22 = sphi %s5096_s22, %s6065_s22   ;;  %s5022_s21 = sphi %s5094_s21, %s6064_s21  }
   0xa   : > { %s32_s7 = sadd.s32 1, %s5042_s26  ;;  %s35_s8 = sadd.s32 1, %s5046_s27 }
   0xb   : > { %p33_p0 = scmp.ge.s32.totalorder %s32_s7, 2  ;;  %p138_p1 = scmp.ne.s32.totalorder %s5030_s23, %s5026_s22 }
   0xc   : > { %p139_p2 = scmp.eq.s32.totalorder %s3626_s29, 3  ;;  %p144_p5 = scmp.ne.s32.totalorder %s5026_s22, %s5022_s21 }
   0xd   : > { %s6072_s7 = smov (%p33_p0, %s32_s7), 0  ;;  %s6074_s8 = smov (!%p33_p0, %s35_s8), %s5046_s27 }
   0xe   : > { %s124_s9 = ssub.s32 %s5042_s26, %s6072_s7  ;;  %p5145_p3 = por %p139_p2, %p138_p1 }
   0xf   : > { %p37_p4 = scmp.ge.s32.totalorder %s6074_s8, 2  ;;  %p145_p6 = scmp.eq.s32.totalorder %s3627_s30, 3 }
  0x10   : > { %p3629_p7 = scmp.ge.s32.totalorder %s5050_s28, 1  ;;  %p203_p9 = scmp.lt.s32.totalorder %s5050_s28, 5 }
  0x11   : > { %s6076_s8 = smov (%p37_p4, %s6074_s8), 0  ;;  %p5154_p8 = por %p145_p6, %p144_p5 }
  0x12   : > { %6055 = sst [smem:[#allocation13_spill]] %s6076_s8  ;;  %s123_s12 = ssub.s32 %s5046_s27, %s6076_s8 }
  0x13   : > { %s128_s13 = sadd.s32 1, %s5030_s23  ;;  %s125_s14 = sor.u32 %s124_s9, %s123_s12 }
  0x14   : > { %p204_p10 = pnand %p3629_p7, %p203_p9  ;;  %p126_p11 = scmp.eq.s32.totalorder %s125_s14, 0 }
  0x15   : > { %s5166_s16 = sand.u32 (!%p204_p10), 1, %s5026_s22   ;;  %s3633_s17 = smul.u32 (!%p204_p10), 192, %s5034_s24 }
  0x16   : > { %s5163_s15 = scalar_select %p126_p11, %s5030_s23, %s128_s13  }
  0x17   : > { %207 = sbr.rel (%p204_p10) target bundleno = 560 (0x230), region = 36  ;;  %s3630_s18 = sshll.u32 (!%p204_p10), %s5166_s16, 6 }
  0x18   : > { %s3631_s19 = sshll.u32 (!%p204_p10), %s5166_s16, 1  ;;  %s235_s20 = smul.u32 (!%p204_p10), 480, %s5038_s25 }
  0x19   : > { %s6057_s0 = sld [smem:[#allocation14_spill]] (!%p204_p10)  ;;  %s5215_s8 = scalar_lea.vmem (!%p204_p10), [#allocation5], %s3630_s18 }
  0x1a   : > { %s236_s29 = sadd.s32 (!%p204_p10), %s3633_s17, %s235_s20  ;;  %s5219_s12 = scalar_lea.vmem (!%p204_p10), [#allocation7], %s3631_s19 }
  0x1f   : > { %s5175_s9 = scalar_lea.vmem %s6057_s0, %s236_s29 }
  0x20   : > { %v297_v0 = vld [vmem:[%s5175_s9] sm:$0xff]  ;;  %v299_v1 = vld [vmem:[%s5175_s9 + $0x8] sm:$0xff]  ;;  %v301_v2 = vld [vmem:[%s5175_s9 + $0x18] sm:$0xff] }
  0x21   : > { %298 = vst [vmem:[#allocation2] sm:$0xff] %v297_v0  ;;  %300 = vst [vmem:[#allocation2 + $0x8] sm:$0xff] %v299_v1  ;;  %v303_v3 = vld [vmem:[%s5175_s9 + $0x20] sm:$0xff]  ;;  %v305_v4 = vld [vmem:[%s5175_s9 + $0x30] sm:$0xff] }
  0x22   : > { %302 = vst [vmem:[#allocation2 + $0x18] sm:$0xff] %v301_v2  ;;  %v307_v5 = vld [vmem:[%s5175_s9 + $0x38] sm:$0xff]  ;;  %304 = vst [vmem:[#allocation2 + $0x20] sm:$0xff] %v303_v3  ;;  %v309_v6 = vld [vmem:[%s5175_s9 + $0x48] sm:$0xff] }
  0x23   : > { %306 = vst [vmem:[#allocation2 + $0x30] sm:$0xff] %v305_v4  ;;  %308 = vst [vmem:[#allocation2 + $0x38] sm:$0xff] %v307_v5  ;;  %v311_v7 = vld [vmem:[%s5175_s9 + $0x50] sm:$0xff]  ;;  %v313_v8 = vld [vmem:[%s5175_s9 + $0x60] sm:$0xff] }
  0x24   : > { %310 = vst [vmem:[#allocation2 + $0x48] sm:$0xff] %v309_v6  ;;  %312 = vst [vmem:[#allocation2 + $0x50] sm:$0xff] %v311_v7  ;;  %v315_v9 = vld [vmem:[%s5175_s9 + $0x68] sm:$0xff]  ;;  %v317_v10 = vld [vmem:[%s5175_s9 + $0x78] sm:$0xff] }
  0x25   : > { %314 = vst [vmem:[#allocation2 + $0x60] sm:$0xff] %v313_v8  ;;  %v319_v11 = vld [vmem:[%s5175_s9 + $0x80] sm:$0xff]  ;;  %316 = vst [vmem:[#allocation2 + $0x68] sm:$0xff] %v315_v9  ;;  %v321_v12 = vld [vmem:[%s5175_s9 + $0x90] sm:$0xff] }
  0x26   : > { %318 = vst [vmem:[#allocation2 + $0x78] sm:$0xff] %v317_v10  ;;  %320 = vst [vmem:[#allocation2 + $0x80] sm:$0xff] %v319_v11  ;;  %v323_v13 = vld [vmem:[%s5175_s9 + $0x98] sm:$0xff]  ;;  %v325_v14 = vld [vmem:[%s5175_s9 + $0xa8] sm:$0xff] }
  0x27   : > { %322 = vst [vmem:[#allocation2 + $0x90] sm:$0xff] %v321_v12  ;;  %324 = vst [vmem:[#allocation2 + $0x98] sm:$0xff] %v323_v13  ;;  %v327_v15 = vld [vmem:[%s5175_s9 + $0xb0] sm:$0xff]  ;;  %v329_v16 = vld [vmem:[%s5175_s9 + $0xc0] sm:$0xff] }
  0x28   : > { %326 = vst [vmem:[#allocation2 + $0xa8] sm:$0xff] %v325_v14  ;;  %v331_v17 = vld [vmem:[%s5175_s9 + $0xc8] sm:$0xff]  ;;  %328 = vst [vmem:[#allocation2 + $0xb0] sm:$0xff] %v327_v15  ;;  %v333_v18 = vld [vmem:[%s5175_s9 + $0xd8] sm:$0xff] }
  0x29   : > { %330 = vst [vmem:[#allocation2 + $0xc0] sm:$0xff] %v329_v16  ;;  %332 = vst [vmem:[#allocation2 + $0xc8] sm:$0xff] %v331_v17  ;;  %v335_v19 = vld [vmem:[%s5175_s9 + $0xe0] sm:$0xff]  ;;  %v337_v20 = vld [vmem:[%s5175_s9 + $0xf0] sm:$0xff] }
  0x2a   : > { %334 = vst [vmem:[#allocation2 + $0xd8] sm:$0xff] %v333_v18  ;;  %336 = vst [vmem:[#allocation2 + $0xe0] sm:$0xff] %v335_v19  ;;  %v339_v21 = vld [vmem:[%s5175_s9 + $0xf8] sm:$0xff]  ;;  %v341_v22 = vld [vmem:[%s5175_s9 + $0x108] sm:$0xff] }
  0x2b   : > { %338 = vst [vmem:[#allocation2 + $0xf0] sm:$0xff] %v337_v20  ;;  %v343_v23 = vld [vmem:[%s5175_s9 + $0x110] sm:$0xff]  ;;  %340 = vst [vmem:[#allocation2 + $0xf8] sm:$0xff] %v339_v21  ;;  %v3635_v25 = vld [vmem:[%s5175_s9 + $0x28] sm:$0xf] }
  0x2c   : > { %342 = vst [vmem:[#allocation2 + $0x108] sm:$0xff] %v341_v22  ;;  %344 = vst [vmem:[#allocation2 + $0x110] sm:$0xff] %v343_v23  ;;  %v3634_v24 = vld [vmem:[%s5175_s9 + $0x10] sm:$0xf]  ;;  %v3636_v26 = vld [vmem:[%s5175_s9 + $0x40] sm:$0xf] }
  0x2d   : > { %355 = vst [vmem:[#allocation2 + $0x10] sm:$0xf] %v3634_v24  ;;  %357 = vst [vmem:[#allocation2 + $0x28] sm:$0xf] %v3635_v25  ;;  %v3637_v27 = vld [vmem:[%s5175_s9 + $0x58] sm:$0xf] }
  0x2e   : > { %359 = vst [vmem:[#allocation2 + $0x40] sm:$0xf] %v3636_v26  ;;  %v3638_v28 = vld [vmem:[%s5175_s9 + $0x70] sm:$0xf]  ;;  %v3639_v29 = vld [vmem:[%s5175_s9 + $0x88] sm:$0xf] }
  0x2f   : > { %361 = vst [vmem:[#allocation2 + $0x58] sm:$0xf] %v3637_v27  ;;  %363 = vst [vmem:[#allocation2 + $0x70] sm:$0xf] %v3638_v28  ;;  %v3640_v30 = vld [vmem:[%s5175_s9 + $0xa0] sm:$0xf] }
  0x30   : > { %365 = vst [vmem:[#allocation2 + $0x88] sm:$0xf] %v3639_v29  ;;  %v3641_v31 = vld [vmem:[%s5175_s9 + $0xb8] sm:$0xf]  ;;  %v3642_v32 = vld [vmem:[%s5175_s9 + $0xd0] sm:$0xf] }
  0x31   : > { %367 = vst [vmem:[#allocation2 + $0xa0] sm:$0xf] %v3640_v30  ;;  %369 = vst [vmem:[#allocation2 + $0xb8] sm:$0xf] %v3641_v31  ;;  %v3643_v33 = vld [vmem:[%s5175_s9 + $0xe8] sm:$0xf] }
  0x32   : > { %371 = vst [vmem:[#allocation2 + $0xd0] sm:$0xf] %v3642_v32  ;;  %v3644_v34 = vld [vmem:[%s5175_s9 + $0x100] sm:$0xf]  ;;  %v3645_v35 = vld [vmem:[%s5175_s9 + $0x118] sm:$0xf] }
  0x33   : > { %373 = vst [vmem:[#allocation2 + $0xe8] sm:$0xf] %v3643_v33  ;;  %375 = vst [vmem:[#allocation2 + $0x100] sm:$0xf] %v3644_v34 }
  0x34   : > { %377 = vst [vmem:[#allocation2 + $0x118] sm:$0xf] %v3645_v35 }
  0x35   : > { %381 = vsyncadd [#allocation4], 3840 }
  0x36   : > { %5010 = dma.done.wait [#allocation4], 3840 }
  0x37   : > { %5011 = vsyncadd [#allocation4], 4294963456  ;;  %v387_v36 = vld [vmem:[#allocation2] sm:$0xff]  ;;  %v388_v37 = vld [vmem:[#allocation2 + $0x8] sm:$0xff]  ;;  %v5052_v26 = vmov 0   ;;  %p3684_p12 = scmp.ne.s32.totalorder %s5034_s24, 0 }
  0x38   : > { %v5224_v38 = vld [vmem:[%s6046_s1] ss:$0 sm:$0xff]  ;;  %v389_v42 = vld [vmem:[#allocation2 + $0x10] sm:$0xf]  ;;  %v390_v43 = vld [vmem:[#allocation2 + $0x18] sm:$0xff] }
  0x39   : > { %v430_v39 = vmul.f32 %v5224_v38, %v387_v36  ;;  %v431_v40 = vmul.f32 %v5224_v38, %v388_v37  ;;  %v5231_v41 = vld [vmem:[%s6047_s2] ss:$0 sm:$0xff]  ;;  %v432_v44 = vmul.f32 %v5224_v38, %v389_v42  ;;  %v433_v45 = vmul.f32 %v5224_v38, %v390_v43  ;;  %v392_v46 = vld [vmem:[#allocation2 + $0x28] sm:$0xf]  ;;  %v393_v47 = vld [vmem:[#allocation2 + $0x30] sm:$0xff] }
  0x3a   : > { %v394_v48 = vld [vmem:[#allocation2 + $0x38] sm:$0xff]  ;;  %v435_v51 = vmul.f32 %v5224_v38, %v392_v46  ;;  %v436_v52 = vmul.f32 %v5224_v38, %v393_v47  ;;  %v395_v53 = vld [vmem:[#allocation2 + $0x40] sm:$0xf]  ;;  %v396_v58 = vld [vmem:[#allocation2 + $0x48] sm:$0xff] }
  0x3b   : > { %v473_v49 = vadd.f32 %v5231_v41, %v430_v39  ;;  %v474_v50 = vadd.f32 %v5231_v41, %v431_v40  ;;  %v475_v54 = vadd.f32 %v5231_v41, %v432_v44  ;;  %v476_v55 = vadd.f32 %v5231_v41, %v433_v45  ;;  %v398_v3 = vld [vmem:[#allocation2 + $0x58] sm:$0xf]  ;;  %v399_v4 = vld [vmem:[#allocation2 + $0x60] sm:$0xff]  ;;  %v400_v9 = vld [vmem:[#allocation2 + $0x68] sm:$0xff] }
  0x3c   : > { %v437_v56 = vmul.f32 %v5224_v38, %v394_v48  ;;  %v438_v57 = vmul.f32 %v5224_v38, %v395_v53  ;;  %v478_v61 = vadd.f32 %v5231_v41, %v435_v51  ;;  %v479_v62 = vadd.f32 %v5231_v41, %v436_v52  ;;  %v401_v10 = vld [vmem:[#allocation2 + $0x70] sm:$0xf]  ;;  %v402_v15 = vld [vmem:[#allocation2 + $0x78] sm:$0xff]  ;;  %v404_v20 = vld [vmem:[#allocation2 + $0x88] sm:$0xf] }
  0x3d   : > { %v509_v59 = vmax.f32 %v473_v49, 0.0  ;;  %v510_v60 = vmax.f32 %v474_v50, 0.0  ;;  %v511_v63 = vmax.f32 %v475_v54, 0.0  ;;  %v512_v0 = vmax.f32 %v476_v55, 0.0  ;;  %v405_v21 = vld [vmem:[#allocation2 + $0x90] sm:$0xff]  ;;  %v406_v31 = vld [vmem:[#allocation2 + $0x98] sm:$0xff] }
  0x3e   : > { %v480_v1 = vadd.f32 %v5231_v41, %v437_v56  ;;  %v481_v2 = vadd.f32 %v5231_v41, %v438_v57  ;;  %v514_v6 = vmax.f32 %v478_v61, 0.0  ;;  %v515_v7 = vmax.f32 %v479_v62, 0.0  ;;  %v407_v36 = vld [vmem:[#allocation2 + $0xa0] sm:$0xf]  ;;  %v408_v47 = vld [vmem:[#allocation2 + $0xa8] sm:$0xff] }
  0x3f   : > { %v4090_v5 = vpack.c.bf16 %v510_v60, %v509_v59  ;;  %v439_v8 = vmul.f32 %v5224_v38, %v396_v58  ;;  %v4036_v11 = vpack.c.bf16 %v511_v63, %v511_v63  ;;  %v4037_v12 = vpack.c.bf16 %v512_v0, %v512_v0  ;;  %v410_v52 = vld [vmem:[#allocation2 + $0xb8] sm:$0xf]  ;;  %v411_v53 = vld [vmem:[#allocation2 + $0xc0] sm:$0xff]  ;;  %v412_v58 = vld [vmem:[#allocation2 + $0xc8] sm:$0xff] }
  0x40   : > { %v516_v13 = vmax.f32 %v480_v1, 0.0  ;;  %v517_v14 = vmax.f32 %v481_v2, 0.0  ;;  %v4039_v16 = vpack.c.bf16 %v514_v6, %v514_v6  ;;  %v441_v18 = vmul.f32 %v5224_v38, %v398_v3  ;;  %v413_v59 = vld [vmem:[#allocation2 + $0xd0] sm:$0xf]  ;;  %v414_v0 = vld [vmem:[#allocation2 + $0xd8] sm:$0xff] }
  0x41   : > { %4091 = vst [vmem:[#allocation3] sm:$0xff] %v4090_v5   ;;  %v482_v17 = vadd.f32 %v5231_v41, %v439_v8  ;;  %v442_v19 = vmul.f32 %v5224_v38, %v399_v4  ;;  %703 = vst [vmem:[#allocation3 + $0x8] sm:$0x3] %v4036_v11  ;;  %v443_v24 = vmul.f32 %v5224_v38, %v400_v9  ;;  %v416_v9 = vld [vmem:[#allocation2 + $0xe8] sm:$0xf] }
  0x42   : > { %704 = vst [vmem:[#allocation3 + $0xc] sm:$0xf] %v4037_v12  ;;  %v4095_v22 = vpack.c.bf16 %v516_v13, %v515_v7  ;;  %v4042_v23 = vpack.c.bf16 %v517_v14, %v517_v14  ;;  %v444_v25 = vmul.f32 %v5224_v38, %v401_v10  ;;  %737 = vst [vmem:[#allocation3] sm:$0x1] %v5052_v26  ;;  %v417_v14 = vld [vmem:[#allocation2 + $0xf0] sm:$0xff] }
  0x43   : > { %706 = vst [vmem:[#allocation3 + $0x14] sm:$0x3] %v4039_v16  ;;  %v518_v27 = vmax.f32 %v482_v17, 0.0  ;;  %v484_v28 = vadd.f32 %v5231_v41, %v441_v18  ;;  %v485_v29 = vadd.f32 %v5231_v41, %v442_v19  ;;  %v445_v30 = vmul.f32 %v5224_v38, %v402_v15  ;;  %738 = vst [vmem:[#allocation3 + $0xc] sm:$0x1] %v5052_v26  ;;  %v418_v19 = vld [vmem:[#allocation2 + $0xf8] sm:$0xff] }
  0x44   : > { %749 = vst [vmem:[#allocation3 + $0x8] sm:$0x2] %v5052_v26  ;;  %4157 = vst [vmem:[#allocation3 + $0x18] sm:$0xff] %v4095_v22   ;;  %v486_v32 = vadd.f32 %v5231_v41, %v443_v24  ;;  %v487_v33 = vadd.f32 %v5231_v41, %v444_v25  ;;  %v447_v34 = vmul.f32 %v5224_v38, %v404_v20  ;;  %v419_v24 = vld [vmem:[#allocation2 + $0x100] sm:$0xf] }
  0x45   : > { %709 = vst [vmem:[#allocation3 + $0x20] sm:$0x3] %v4042_v23  ;;  %v448_v35 = vmul.f32 %v5224_v38, %v405_v21  ;;  %750 = vst [vmem:[#allocation3 + $0x14] sm:$0x2] %v5052_v26  ;;  %v4043_v37 = vpack.c.bf16 %v518_v27, %v518_v27  ;;  %v520_v39 = vmax.f32 %v484_v28, 0.0  ;;  %v521_v40 = vmax.f32 %v485_v29, 0.0 }
  0x46   : > { %v488_v42 = vadd.f32 %v5231_v41, %v445_v30  ;;  %739 = vst [vmem:[#allocation3 + $0x18] sm:$0x1] %v5052_v26  ;;  %751 = vst [vmem:[#allocation3 + $0x20] sm:$0x2] %v5052_v26  ;;  %v522_v43 = vmax.f32 %v486_v32, 0.0  ;;  %v523_v44 = vmax.f32 %v487_v33, 0.0  ;;  %v490_v45 = vadd.f32 %v5231_v41, %v447_v34 }
  0x47   : > { %v449_v46 = vmul.f32 %v5224_v38, %v406_v31  ;;  %710 = vst [vmem:[#allocation3 + $0x24] sm:$0xf] %v4043_v37  ;;  %v4045_v48 = vpack.c.bf16 %v520_v39, %v520_v39  ;;  %v491_v50 = vadd.f32 %v5231_v41, %v448_v35  ;;  %v450_v51 = vmul.f32 %v5224_v38, %v407_v36  ;;  %v420_v30 = vld [vmem:[#allocation2 + $0x108] sm:$0xff]  ;;  %v422_v35 = vld [vmem:[#allocation2 + $0x118] sm:$0xf]  ;;  %v391_v36 = vld [vmem:[#allocation2 + $0x20] sm:$0xff] }
  0x48   : > { %v524_v49 = vmax.f32 %v488_v42, 0.0  ;;  %v4100_v54 = vpack.c.bf16 %v522_v43, %v521_v40  ;;  %v4048_v55 = vpack.c.bf16 %v523_v44, %v523_v44  ;;  %v526_v56 = vmax.f32 %v490_v45, 0.0  ;;  %740 = vst [vmem:[#allocation3 + $0x24] sm:$0x1] %v5052_v26  ;;  %v397_v43 = vld [vmem:[#allocation2 + $0x50] sm:$0xff] }
  0x49   : > { %v492_v57 = vadd.f32 %v5231_v41, %v449_v46  ;;  %712 = vst [vmem:[#allocation3 + $0x2c] sm:$0x3] %v4045_v48  ;;  %v527_v61 = vmax.f32 %v491_v50, 0.0  ;;  %v493_v62 = vadd.f32 %v5231_v41, %v450_v51  ;;  %v451_v63 = vmul.f32 %v5224_v38, %v408_v47  ;;  %v403_v48 = vld [vmem:[#allocation2 + $0x80] sm:$0xff] }
  0x4a   : > { %v4049_v60 = vpack.c.bf16 %v524_v49, %v524_v49  ;;  %4158 = vst [vmem:[#allocation3 + $0x30] sm:$0xff] %v4100_v54   ;;  %715 = vst [vmem:[#allocation3 + $0x38] sm:$0x3] %v4048_v55  ;;  %v4051_v1 = vpack.c.bf16 %v526_v56, %v526_v56  ;;  %v453_v3 = vmul.f32 %v5224_v38, %v410_v52 }
  0x4b   : > { %v528_v2 = vmax.f32 %v492_v57, 0.0  ;;  %v454_v4 = vmul.f32 %v5224_v38, %v411_v53  ;;  %752 = vst [vmem:[#allocation3 + $0x2c] sm:$0x2] %v5052_v26  ;;  %v529_v5 = vmax.f32 %v493_v62, 0.0  ;;  %v494_v6 = vadd.f32 %v5231_v41, %v451_v63  ;;  %741 = vst [vmem:[#allocation3 + $0x30] sm:$0x1] %v5052_v26 }
  0x4c   : > { %716 = vst [vmem:[#allocation3 + $0x3c] sm:$0xf] %v4049_v60  ;;  %v455_v7 = vmul.f32 %v5224_v38, %v412_v58  ;;  %v456_v8 = vmul.f32 %v5224_v38, %v413_v59  ;;  %753 = vst [vmem:[#allocation3 + $0x38] sm:$0x2] %v5052_v26  ;;  %v496_v11 = vadd.f32 %v5231_v41, %v453_v3  ;;  %v409_v53 = vld [vmem:[#allocation2 + $0xb0] sm:$0xff]  ;;  %v415_v62 = vld [vmem:[#allocation2 + $0xe0] sm:$0xff] }
  0x4d   : > { %718 = vst [vmem:[#allocation3 + $0x44] sm:$0x3] %v4051_v1  ;;  %v4105_v10 = vpack.c.bf16 %v528_v2, %v527_v61  ;;  %v497_v12 = vadd.f32 %v5231_v41, %v454_v4  ;;  %v457_v13 = vmul.f32 %v5224_v38, %v414_v0  ;;  %742 = vst [vmem:[#allocation3 + $0x3c] sm:$0x1] %v5052_v26  ;;  %v530_v16 = vmax.f32 %v494_v6, 0.0  ;;  %v421_v3 = vld [vmem:[#allocation2 + $0x110] sm:$0xff] }
  0x4e   : > { %v4054_v15 = vpack.c.bf16 %v529_v5, %v529_v5  ;;  %v498_v17 = vadd.f32 %v5231_v41, %v455_v7  ;;  %v499_v18 = vadd.f32 %v5231_v41, %v456_v8  ;;  %754 = vst [vmem:[#allocation3 + $0x44] sm:$0x2] %v5052_v26  ;;  %v532_v20 = vmax.f32 %v496_v11, 0.0 }
  0x4f   : > { %4159 = vst [vmem:[#allocation3 + $0x48] sm:$0xff] %v4105_v10   ;;  %v533_v21 = vmax.f32 %v497_v12, 0.0  ;;  %v500_v22 = vadd.f32 %v5231_v41, %v457_v13  ;;  %v459_v23 = vmul.f32 %v5224_v38, %v416_v9  ;;  %v4055_v25 = vpack.c.bf16 %v530_v16, %v530_v16 }
  0x50   : > { %721 = vst [vmem:[#allocation3 + $0x50] sm:$0x3] %v4054_v15  ;;  %v534_v27 = vmax.f32 %v498_v17, 0.0  ;;  %v535_v28 = vmax.f32 %v499_v18, 0.0  ;;  %v460_v29 = vmul.f32 %v5224_v38, %v417_v14  ;;  %743 = vst [vmem:[#allocation3 + $0x48] sm:$0x1] %v5052_v26  ;;  %v4057_v31 = vpack.c.bf16 %v532_v20, %v532_v20 }
  0x51   : > { %v536_v32 = vmax.f32 %v500_v22, 0.0  ;;  %v502_v33 = vadd.f32 %v5231_v41, %v459_v23  ;;  %v461_v34 = vmul.f32 %v5224_v38, %v418_v19  ;;  %755 = vst [vmem:[#allocation3 + $0x50] sm:$0x2] %v5052_v26  ;;  %722 = vst [vmem:[#allocation3 + $0x54] sm:$0xf] %v4055_v25  ;;  %v462_v42 = vmul.f32 %v5224_v38, %v419_v24 }
  0x52   : > { %v4110_v37 = vpack.c.bf16 %v534_v27, %v533_v21  ;;  %v4060_v39 = vpack.c.bf16 %v535_v28, %v535_v28  ;;  %v503_v40 = vadd.f32 %v5231_v41, %v460_v29  ;;  %724 = vst [vmem:[#allocation3 + $0x5c] sm:$0x3] %v4057_v31  ;;  %v463_v47 = vmul.f32 %v5224_v38, %v420_v30 }
  0x53   : > { %v4061_v44 = vpack.c.bf16 %v536_v32, %v536_v32  ;;  %v538_v45 = vmax.f32 %v502_v33, 0.0  ;;  %v504_v46 = vadd.f32 %v5231_v41, %v461_v34  ;;  %744 = vst [vmem:[#allocation3 + $0x54] sm:$0x1] %v5052_v26  ;;  %v505_v50 = vadd.f32 %v5231_v41, %v462_v42  ;;  %756 = vst [vmem:[#allocation3 + $0x5c] sm:$0x2] %v5052_v26 }
  0x54   : > { %4160 = vst [vmem:[#allocation3 + $0x60] sm:$0xff] %v4110_v37   ;;  %727 = vst [vmem:[#allocation3 + $0x68] sm:$0x3] %v4060_v39  ;;  %v539_v49 = vmax.f32 %v503_v40, 0.0  ;;  %v465_v51 = vmul.f32 %v5224_v38, %v422_v35  ;;  %v434_v52 = vmul.f32 %v5224_v38, %v391_v36  ;;  %v506_v56 = vadd.f32 %v5231_v41, %v463_v47 }
  0x55   : > { %728 = vst [vmem:[#allocation3 + $0x6c] sm:$0xf] %v4061_v44  ;;  %v4063_v54 = vpack.c.bf16 %v538_v45, %v538_v45  ;;  %v540_v55 = vmax.f32 %v504_v46, 0.0  ;;  %v440_v57 = vmul.f32 %v5224_v38, %v397_v43  ;;  %745 = vst [vmem:[#allocation3 + $0x60] sm:$0x1] %v5052_v26  ;;  %v541_v58 = vmax.f32 %v505_v50, 0.0 }
  0x56   : > { %757 = vst [vmem:[#allocation3 + $0x68] sm:$0x2] %v5052_v26  ;;  %v508_v59 = vadd.f32 %v5231_v41, %v465_v51  ;;  %v477_v60 = vadd.f32 %v5231_v41, %v434_v52  ;;  %v446_v61 = vmul.f32 %v5224_v38, %v403_v48  ;;  %746 = vst [vmem:[#allocation3 + $0x6c] sm:$0x1] %v5052_v26  ;;  %v542_v0 = vmax.f32 %v506_v56, 0.0 }
  0x57   : > { %730 = vst [vmem:[#allocation3 + $0x74] sm:$0x3] %v4063_v54  ;;  %v4115_v63 = vpack.c.bf16 %v540_v55, %v539_v49  ;;  %v483_v1 = vadd.f32 %v5231_v41, %v440_v57  ;;  %v452_v2 = vmul.f32 %v5224_v38, %v409_v53  ;;  %v4066_v4 = vpack.c.bf16 %v541_v58, %v541_v58 }
  0x58   : > { %v544_v5 = vmax.f32 %v508_v59, 0.0  ;;  %v513_v6 = vmax.f32 %v477_v60, 0.0  ;;  %v489_v7 = vadd.f32 %v5231_v41, %v446_v61  ;;  %758 = vst [vmem:[#allocation3 + $0x74] sm:$0x2] %v5052_v26  ;;  %v4067_v8 = vpack.c.bf16 %v542_v0, %v542_v0 }
  0x59   : > { %4161 = vst [vmem:[#allocation3 + $0x78] sm:$0xff] %v4115_v63   ;;  %v519_v9 = vmax.f32 %v483_v1, 0.0  ;;  %v495_v10 = vadd.f32 %v5231_v41, %v452_v2  ;;  %v458_v11 = vmul.f32 %v5224_v38, %v415_v62  ;;  %733 = vst [vmem:[#allocation3 + $0x80] sm:$0x3] %v4066_v4  ;;  %v464_v15 = vmul.f32 %v5224_v38, %v421_v3 }
  0x5a   : > { %v4069_v12 = vpack.c.bf16 %v544_v5, %v544_v5  ;;  %v4038_v13 = vpack.c.bf16 %v513_v6, %v513_v6  ;;  %v525_v14 = vmax.f32 %v489_v7, 0.0  ;;  %747 = vst [vmem:[#allocation3 + $0x78] sm:$0x1] %v5052_v26  ;;  %734 = vst [vmem:[#allocation3 + $0x84] sm:$0xf] %v4067_v8  ;;  %v5053_v25 = vmov (!%p3684_p12), 0  }
  0x5b   : > { %v4044_v16 = vpack.c.bf16 %v519_v9, %v519_v9  ;;  %v531_v17 = vmax.f32 %v495_v10, 0.0  ;;  %v501_v18 = vadd.f32 %v5231_v41, %v458_v11  ;;  %759 = vst [vmem:[#allocation3 + $0x80] sm:$0x2] %v5052_v26  ;;  %v507_v20 = vadd.f32 %v5231_v41, %v464_v15  ;;  %748 = vst [vmem:[#allocation3 + $0x84] sm:$0x1] %v5052_v26  ;;  %764 = sbr.rel (%p3684_p12) target bundleno = 99 (0x63), region = 77 }
  0x5c   : > { %736 = vst [vmem:[#allocation3 + $0x8c] sm:$0x3] %v4069_v12  ;;  %705 = vst [vmem:[#allocation3 + $0x10] sm:$0xf] %v4038_v13  ;;  %v4050_v19 = vpack.c.bf16 %v525_v14, %v525_v14 }
  0x5d   : > { %711 = vst [vmem:[#allocation3 + $0x28] sm:$0xf] %v4044_v16  ;;  %v4056_v21 = vpack.c.bf16 %v531_v17, %v531_v17  ;;  %v537_v22 = vmax.f32 %v501_v18, 0.0  ;;  %760 = vst [vmem:[#allocation3 + $0x8c] sm:$0x2] %v5052_v26  ;;  %v543_v38 = vmax.f32 %v507_v20, 0.0 }
  0x5e   : > { %717 = vst [vmem:[#allocation3 + $0x40] sm:$0xf] %v4050_v19  ;;  %765 = vst [vmem:[#allocation3] sm:$0xf] (!%p3684_p12), %v5053_v25 }
  0x5f   : > { %723 = vst [vmem:[#allocation3 + $0x58] sm:$0xf] %v4056_v21  ;;  %v4062_v23 = vpack.c.bf16 %v537_v22, %v537_v22  ;;  %v4068_v24 = vpack.c.bf16 %v543_v38, %v543_v38  ;;  %766 = vst [vmem:[#allocation3 + $0x4] sm:$0xf] (!%p3684_p12), %v5053_v25 }
  0x60   : > { %767 = vst [vmem:[#allocation3 + $0x8] sm:$0x3] (!%p3684_p12), %v5053_v25  ;;  %768 = vst [vmem:[#allocation3 + $0xc] sm:$0xf] (!%p3684_p12), %v5053_v25 }
  0x61   : > { %729 = vst [vmem:[#allocation3 + $0x70] sm:$0xf] %v4062_v23  ;;  %735 = vst [vmem:[#allocation3 + $0x88] sm:$0xf] %v4068_v24 }
  0x62   : > { %769 = vst [vmem:[#allocation3 + $0x10] sm:$0xf] %v5053_v25  ;;  %770 = vst [vmem:[#allocation3 + $0x14] sm:$0x3] %v5053_v25 }
  0x63 PF: > { %p3685_p13 = scmp.ne.s32.totalorder %s5034_s24, 1 }
  0x64   : > { %v5054_v41 = vmov (!%p3685_p13), 0  }
  0x65   : > { %774 = sbr.rel (%p3685_p13) target bundleno = 108 (0x6c), region = 81  ;;  %776 = vst [vmem:[#allocation3 + $0x78] sm:$0xf] (!%p3685_p13), %v5054_v41  ;;  %777 = vst [vmem:[#allocation3 + $0x7c] sm:$0xf] (!%p3685_p13), %v5054_v41 }
  0x66   : > { %778 = vst [vmem:[#allocation3 + $0x80] sm:$0x3] (!%p3685_p13), %v5054_v41  ;;  %779 = vst [vmem:[#allocation3 + $0x84] sm:$0xf] (!%p3685_p13), %v5054_v41 }
  0x67   : > { %780 = vst [vmem:[#allocation3 + $0x88] sm:$0xf] (!%p3685_p13), %v5054_v41  ;;  %781 = vst [vmem:[#allocation3 + $0x8c] sm:$0x3] (!%p3685_p13), %v5054_v41 }
  0x6c PF: > { %v4826_v26 = vld [vmem:[%s6048_s3 + $0x40] sm:$0xff]   ;;  %v4828_v28 = vld [vmem:[%s6048_s3 + $0x48] sm:$0xff]   ;;  %v4830_v30 = vld [vmem:[%s6048_s3 + $0x50] sm:$0xff]   ;;  %vm854_vm0 = vcmask 1042432   ;;  %vm855_vm1 = vcmask 1046532   ;;  %vm1324_vm3 = vcmask 1041408  }
  0x6d   : > { %v4827_v27 = vld [vmem:[%s6048_s3 + $0x100] sm:$0xff]   ;;  %4313 = vmatprep.subr.bf16.mxu1 %v4826_v26  ;;  %v4829_v29 = vld [vmem:[%s6048_s3 + $0x108] sm:$0xff]   ;;  %v4831_v31 = vld [vmem:[%s6048_s3 + $0x110] sm:$0xff]   ;;  %vm1325_vm4 = vcmask 1045508   ;;  %s4086_s29 = sshll.u32 %s5034_s24, 4  ;;  %s4027_s30 = sshll.u32 %s5038_s25, 5 }
  0x6e   : > { %4441 = vmatprep.subr.bf16.mxu0 %v4827_v27  ;;  %4314 = vmatpush3.bf16.msra.mxu1 %v4826_v26  ;;  %v4832_v32 = vld [vmem:[%s6048_s3 + $0x58] sm:$0xff]   ;;  %v4834_v34 = vld [vmem:[%s6048_s3 + $0x60] sm:$0xff]   ;;  %v4836_v36 = vld [vmem:[%s6048_s3 + $0x68] sm:$0xff]   ;;  %s3486_s9 = sadd.s32 %s4086_s29, %s4027_s30  ;;  %s3489_s13 = sshll.u32 %s5215_s8, 4  ;;  %s5932_s13 = int_to_ptr.vmem [resolvable:$true] %s3489_s13 }
  0x6f   : > { %4442 = vmatpush3.bf16.msra.mxu0 %v4827_v27  ;;  %4315 = vmatprep.subr.bf16.mxu1 %v4828_v28  ;;  %v4833_v33 = vld [vmem:[%s6048_s3 + $0x118] sm:$0xff]   ;;  %v4835_v35 = vld [vmem:[%s6048_s3 + $0x120] sm:$0xff]   ;;  %v815_v40 = vld [vmem:[#allocation3 + $0x8] sm:$0x1]  ;;  %s4028_s14 = sshll.u32 %s3486_s9, 6  ;;  %s4922_s29 = scalar_lea.vmem %s5932_s13, 1024 }
  0x70   : > { %4443 = vmatprep.subr.bf16.mxu0 %v4829_v29  ;;  %v5362_v37 = vld [vmem:[#allocation3 + $0x4] sm:$0xf]  ;;  %v814_v39 = vld [vmem:[#allocation3] sm:$0xe]  ;;  %v4837_v42 = vld [vmem:[%s6048_s3 + $0x128] sm:$0xff]   ;;  %v862_v46 = vrot.slane %v815_v40, 5  ;;  %s5938_s19 = scalar_lea.hbm %s6050_s5, %s4028_s14  ;;  %p4923_p0 = scmp.ne.s32.totalorder %s5932_s13, %s4922_s29 }
  0x71   : > { %vm5367_vm2 = vmor %vm854_vm0, %vm855_vm1  ;;  %v3686_v44 = vrot.slane %v814_v39, 9  ;;  %v859_v45 = vrot.slane %v5362_v37, 5  ;;  %v1836_v47 = vld [vmem:[#allocation3 + $0x18] sm:$0xe]  ;;  %v5372_v48 = vld [vmem:[#allocation3 + $0x1c] sm:$0xf] }
  0x72   : > { %4316 = vmatpush3.bf16.msra.mxu1 %v4828_v28  ;;  %v1838_v49 = vld [vmem:[#allocation3 + $0x20] sm:$0x1]  ;;  %v3814_v50 = vrot.slane %v1836_v47, 9  ;;  %v1886_v53 = vrot.slane %v5372_v48, 5  ;;  %v5377_v55 = vld [vmem:[#allocation3 + $0x10] sm:$0xf]  ;;  %vm5543_vm5 = vmor %vm1324_vm3, %vm1325_vm4  ;;  %p4924_p1 = pnand %p4923_p0, %p5145_p3 }
  0x73   : > { %4444 = vmatpush3.bf16.msra.mxu0 %v4829_v29  ;;  %4317 = vmatprep.subr.bf16.mxu1 %v4830_v30  ;;  %v860_v51 = vsel %vm5367_vm2, %v3686_v44, %v859_v45  ;;  %v861_v52 = vrot.slane %v859_v45, 4  ;;  %v1889_v54 = vrot.slane %v1838_v49, 5  ;;  %v4838_v56 = vld [vmem:[%s6048_s3 + $0x70] sm:$0xff]   ;;  %v816_v57 = vld [vmem:[#allocation3 + $0xc] sm:$0xe]  ;;  %v866_v59 = vrot.slane %v5377_v55, 5 }
  0x74   : > { %4445 = vmatprep.subr.bf16.mxu0 %v4831_v31  ;;  %v817_v58 = vld [vmem:[#allocation3 + $0x14] sm:$0x1]  ;;  %v1887_v62 = vsel %vm5367_vm2, %v3814_v50, %v1886_v53  ;;  %v1888_v63 = vrot.slane %v1886_v53, 4  ;;  %v3687_v1 = vrot.slane %v816_v57, 9  ;;  %v1839_v4 = vld [vmem:[#allocation3 + $0x24] sm:$0xe]  ;;  %p4925_p2 = pneg %p4924_p1 }
  0x75   : > { %v4839_v60 = vld [vmem:[%s6048_s3 + $0x130] sm:$0xff]   ;;  %v863_v61 = vsel %vm5367_vm2, %v861_v52, %v862_v46  ;;  %v868_v2 = vrot.slane %v866_v59, 4  ;;  %v869_v3 = vrot.slane %v817_v58, 5  ;;  %v4840_v5 = vld [vmem:[%s6048_s3 + $0x78] sm:$0xff]   ;;  %v5395_v7 = vld [vmem:[#allocation3 + $0x28] sm:$0xf] }
  0x76   : > { %4318 = vmatpush3.bf16.msra.mxu1 %v4830_v30  ;;  %v3710_v0 = vcombine.low %v860_v51, %v863_v61  ;;  %v1890_v6 = vsel %vm5367_vm2, %v1888_v63, %v1889_v54  ;;  %v1841_v8 = vld [vmem:[#allocation3 + $0x2c] sm:$0x1]  ;;  %v3815_v10 = vrot.slane %v1839_v4, 9  ;;  %v1893_v11 = vrot.slane %v5395_v7, 5  ;;  %v4841_v12 = vld [vmem:[%s6048_s3 + $0x138] sm:$0xff]   ;;  %v4842_v16 = vld [vmem:[%s6048_s3] sm:$0xff]  }
  0x77   : > { %4446 = vmatpush3.bf16.msra.mxu0 %v4831_v31  ;;  %4319 = vmatprep.subr.bf16.mxu1 %v4832_v32  ;;  %v3838_v9 = vcombine.low %v1887_v62, %v1890_v6  ;;  %v1896_v13 = vrot.slane %v1841_v8, 5  ;;  %v867_v14 = vsel %vm5367_vm2, %v3687_v1, %v866_v59  ;;  %v870_v15 = vsel %vm5367_vm2, %v868_v2, %v869_v3  ;;  %v4843_v19 = vld [vmem:[%s6048_s3 + $0x140] sm:$0xff]   ;;  %v5412_v20 = vld [vmem:[#allocation3 + $0x1c] sm:$0xf]  ;;  %v818_v21 = vld [vmem:[#allocation3 + $0x18] sm:$0xe] }
  0x78   : > { %4447 = vmatprep.subr.bf16.mxu0 %v4833_v33  ;;  %4329 = vmatprep.mubr.bf16.mxu1 %v3710_v0  ;;  %v1895_v17 = vrot.slane %v1893_v11, 4  ;;  %v2184_v18 = vrot.slane %v5372_v48, 6  ;;  %v1894_v22 = vsel %vm5367_vm2, %v3815_v10, %v1893_v11  ;;  %v819_v23 = vld [vmem:[#allocation3 + $0x20] sm:$0x1]  ;;  %v3688_v24 = vrot.slane %v818_v21, 9  ;;  %v4844_v31 = vld [vmem:[%s6048_s3 + $0x8] sm:$0xff]  }
  0x79   : > { %4457 = vmatprep.mubr.bf16.mxu0 %v3838_v9  ;;  %v873_v25 = vrot.slane %v5412_v20, 5  ;;  %v1842_v41 = vld [vmem:[#allocation3 + $0x30] sm:$0xe]  ;;  %v3711_v26 = vcombine.low %v867_v14, %v870_v15  ;;  %v876_v27 = vrot.slane %v819_v23, 5  ;;  %v5419_v28 = vld [vmem:[#allocation3 + $0x34] sm:$0xf] }
  0x7a   : > { %4320 = vmatpush3.bf16.msra.mxu1 %v4832_v32  ;;  %v1897_v38 = vsel %vm5367_vm2, %v1895_v17, %v1896_v13  ;;  %v1844_v29 = vld [vmem:[#allocation3 + $0x38] sm:$0x1]  ;;  %v3816_v30 = vrot.slane %v1842_v41, 9  ;;  %v2191_v40 = vrot.slane %v5395_v7, 6  ;;  %v820_v44 = vld [vmem:[#allocation3 + $0x24] sm:$0xe] }
  0x7b   : > { %4448 = vmatpush3.bf16.msra.mxu0 %v4833_v33  ;;  %4321 = vmatprep.subr.bf16.mxu1 %v4834_v34  ;;  %v874_v32 = vsel %vm5367_vm2, %v3688_v24, %v873_v25  ;;  %v875_v33 = vrot.slane %v873_v25, 4  ;;  %v3839_v39 = vcombine.low %v1894_v22, %v1897_v38  ;;  %v821_v45 = vld [vmem:[#allocation3 + $0x2c] sm:$0x1]  ;;  %v3689_v51 = vrot.slane %v820_v44, 9  ;;  %v5438_v57 = vld [vmem:[#allocation3 + $0x40] sm:$0xf] }
  0x7c   : > { %4449 = vmatprep.subr.bf16.mxu0 %v4835_v35  ;;  %v883_v54 = vrot.slane %v821_v45, 5  ;;  %v1847_v59 = vld [vmem:[#allocation3 + $0x44] sm:$0x1]  ;;  %v1907_v61 = vrot.slane %v5438_v57, 5  ;;  %v4846_v1 = vld [vmem:[%s6048_s3 + $0x10] sm:$0xff]   ;;  %v4848_v22 = vld [vmem:[%s6048_s3 + $0x18] sm:$0xff]  }
  0x7d   : > { %v877_v47 = vsel %vm5367_vm2, %v875_v33, %v876_v27  ;;  %v1910_v2 = vrot.slane %v1847_v59, 5  ;;  %v5455_v6 = vld [vmem:[#allocation3 + $0x34] sm:$0xf]  ;;  %v822_v8 = vld [vmem:[#allocation3 + $0x30] sm:$0xe]  ;;  %v2198_v7 = vrot.slane %v5419_v28, 6 }
  0x7e   : > { %4322 = vmatpush3.bf16.msra.mxu1 %v4834_v34  ;;  %v1900_v34 = vrot.slane %v5419_v28, 5  ;;  %v3712_v52 = vcombine.low %v874_v32, %v877_v47  ;;  %v1909_v4 = vrot.slane %v1907_v61, 4  ;;  %v823_v11 = vld [vmem:[#allocation3 + $0x38] sm:$0x1]  ;;  %v887_v13 = vrot.slane %v5455_v6, 5  ;;  %v4863_v28 = vld [vmem:[%s6048_s3 + $0x188] sm:$0xff]  }
  0x7f   : > { %4450 = vmatpush3.bf16.msra.mxu0 %v4835_v35  ;;  %4323 = vmatprep.subr.bf16.mxu1 %v4836_v36  ;;  %v1903_v35 = vrot.slane %v1844_v29, 5  ;;  %v1848_v14 = vld [vmem:[#allocation3 + $0x48] sm:$0xe]  ;;  %v5460_v17 = vld [vmem:[#allocation3 + $0x4c] sm:$0xf]  ;;  %s5055_s30 = smov [#allocation5]  }
  0x80   : > { %4451 = vmatprep.subr.bf16.mxu0 %v4837_v42  ;;  %v1901_v49 = vsel %vm5367_vm2, %v3816_v30, %v1900_v34  ;;  %v1902_v50 = vrot.slane %v1900_v34, 4  ;;  %v1911_v10 = vsel %vm5367_vm2, %v1909_v4, %v1910_v2  ;;  %v3818_v21 = vrot.slane %v1848_v14, 9  ;;  %v5468_v41 = vld [vmem:[#allocation3 + $0x40] sm:$0xf]  ;;  %v824_v27 = vld [vmem:[#allocation3 + $0x3c] sm:$0xe] }
  0x81   : > { %v889_v23 = vrot.slane %v887_v13, 4  ;;  %v1914_v24 = vrot.slane %v5460_v17, 5  ;;  %v825_v29 = vld [vmem:[#allocation3 + $0x44] sm:$0x1]  ;;  %v894_v30 = vrot.slane %v5468_v41, 5  ;;  %v3691_v34 = vrot.slane %v824_v27, 9 }
  0x82   : > { %4324 = vmatpush3.bf16.msra.mxu1 %v4836_v36  ;;  %v5427_v36 = vld [vmem:[#allocation3 + $0x28] sm:$0xf]  ;;  %v1904_v58 = vsel %vm5367_vm2, %v1902_v50, %v1903_v35  ;;  %v4850_v35 = vld [vmem:[%s6048_s3 + $0x20] sm:$0xff]   ;;  %v897_v44 = vrot.slane %v825_v29, 5  ;;  %v1851_v45 = vld [vmem:[#allocation3 + $0x54] sm:$0xe] }
  0x83   : > { %4452 = vmatpush3.bf16.msra.mxu0 %v4837_v42  ;;  %4325 = vmatprep.subr.bf16.mxu1 %v4838_v56  ;;  %v4845_v42 = vld [vmem:[%s6048_s3 + $0x148] sm:$0xff]   ;;  %v880_v46 = vrot.slane %v5427_v36, 5  ;;  %v3840_v62 = vcombine.low %v1901_v49, %v1904_v58  ;;  %v1915_v32 = vsel %vm5367_vm2, %v3818_v21, %v1914_v24  ;;  %v1916_v33 = vrot.slane %v1914_v24, 4  ;;  %v1853_v50 = vld [vmem:[#allocation3 + $0x5c] sm:$0x1]  ;;  %v4851_v58 = vld [vmem:[%s6048_s3 + $0x160] sm:$0xff]  }
  0x84   : > { %4453 = vmatprep.subr.bf16.mxu0 %v4839_v60  ;;  %v895_v49 = vsel %vm5367_vm2, %v3691_v34, %v894_v30  ;;  %v5511_v21 = vld [vmem:[#allocation3 + $0x58] sm:$0xf]  ;;  %v1857_v34 = vld [vmem:[#allocation3 + $0x6c] sm:$0xe]  ;;  %s4926_s9 = sshll.u32 %s5055_s30, 4  ;;  %s4927_s9 = int_to_ptr.vmem [resolvable:$false] %s4926_s9 }
  0x85   : > { %v882_v53 = vrot.slane %v880_v46, 4  ;;  %v881_v63 = vsel %vm5367_vm2, %v3689_v51, %v880_v46  ;;  %v5481_v46 = vld [vmem:[#allocation3 + $0x58] sm:$0xf]  ;;  %v3819_v51 = vrot.slane %v1851_v45, 9  ;;  %v908_v24 = vrot.slane %v5511_v21, 5  ;;  %s4928_s14 = scalar_lea.vmem %s4927_s9, 2048  ;;  %p4929_p4 = scmp.lt.s32.totalorder %s5932_s13, %s4927_s9 }
  0x86   : > { %4326 = vmatpush3.bf16.msra.mxu1 %v4838_v56  ;;  %v1845_v56 = vld [vmem:[#allocation3 + $0x3c] sm:$0xe]  ;;  %v3821_v45 = vrot.slane %v1857_v34, 9  ;;  %p4930_p5 = scmp.lt.s32.totalorder %s4928_s14, %s4922_s29 }
  0x87   : > { %4454 = vmatpush3.bf16.msra.mxu0 %v4839_v60  ;;  %4327 = vmatprep.subr.bf16.mxu1 %v4840_v5  ;;  %v3817_v60 = vrot.slane %v1845_v56, 9  ;;  %v884_v0 = vsel %vm5367_vm2, %v882_v53, %v883_v54  ;;  %v1924_v56 = vrot.slane %v1853_v50, 5 }
  0x88   : > { %4455 = vmatprep.subr.bf16.mxu0 %v4841_v12  ;;  %v3713_v9 = vcombine.low %v881_v63, %v884_v0  ;;  %v4853_v63 = vld [vmem:[%s6048_s3 + $0x168] sm:$0xff]   ;;  %p4931_p6 = por %p4930_p5, %p4929_p4 }
  0x89   : > { %v1908_v3 = vsel %vm5367_vm2, %v3817_v60, %v1907_v61  ;;  %v5501_v0 = vld [vmem:[#allocation3 + $0x4c] sm:$0xf] }
  0x8a   : > { %4328 = vmatpush3.bf16.msra.mxu1 %v4840_v5  ;;  %v4847_v5 = vld [vmem:[%s6048_s3 + $0x150] sm:$0xff]   ;;  %v3841_v15 = vcombine.low %v1908_v3, %v1911_v10  ;;  %p4932_p7 = pnand %p4931_p6, %p4925_p2 }
  0x8b   : > { %4456 = vmatpush3.bf16.msra.mxu0 %v4841_v12  ;;  %4345 = vmatprep.subr.bf16.mxu1 %v4842_v16  ;;  %v3690_v12 = vrot.slane %v822_v8, 9  ;;  %v827_v3 = vld [vmem:[#allocation3 + $0x50] sm:$0x1]  ;;  %v1854_v8 = vld [vmem:[#allocation3 + $0x60] sm:$0xe] }
  0x8c   : > { %4473 = vmatprep.subr.bf16.mxu0 %v4843_v19  ;;  %v904_v10 = vrot.slane %v827_v3, 5  ;;  %v2151_v3 = vld [vmem:[#allocation3 + $0x20] sm:$0x3] }
  0x8d   : > { %4330 = vmatmul.mubr.bf16.vlgmr.msra.gmra.mrb[0].mxu1 %v3711_v26  ;;  %v888_v38 = vsel %vm5367_vm2, %v3690_v12, %v887_v13  ;;  %v4849_v26 = vld [vmem:[%s6048_s3 + $0x158] sm:$0xff]   ;;  %v1856_v12 = vld [vmem:[#allocation3 + $0x68] sm:$0x1]  ;;  %v3820_v13 = vrot.slane %v1854_v8, 9 }
  0x8e   : > { %4458 = vmatmul.mubr.bf16.vlgmr.msra.gmra.mrb[0].mxu0 %v3839_v39  ;;  %4346 = vmatpush3.bf16.msra.mxu1 %v4842_v16  ;;  %v890_v16 = vrot.slane %v823_v11, 5  ;;  %v5506_v11 = vld [vmem:[#allocation3 + $0x64] sm:$0xf] }
  0x8f   : > { %4474 = vmatpush3.bf16.msra.mxu0 %v4843_v19  ;;  %4347 = vmatprep.subr.bf16.mxu1 %v4844_v31  ;;  %v1850_v19 = vld [vmem:[#allocation3 + $0x50] sm:$0x1] }
  0x90   : > { %4475 = vmatprep.subr.bf16.mxu0 %v4845_v42  ;;  %4333 = vmatprep.mubr.bf16.mxu1 %v3712_v52  ;;  %v1917_v25 = vrot.slane %v1850_v19, 5  ;;  %v1921_v52 = vrot.slane %v5481_v46, 5  ;;  %v1931_v19 = vrot.slane %v1856_v12, 5  ;;  %v4861_v12 = vld [vmem:[%s6048_s3 + $0x180] sm:$0xff]  }
  0x91   : > { %4461 = vmatprep.mubr.bf16.mxu0 %v3840_v62  ;;  %v4852_v62 = vld [vmem:[%s6048_s3 + $0x28] sm:$0xff]  }
  0x92   : > { %4348 = vmatpush3.bf16.msra.mxu1 %v4844_v31  ;;  %v891_v31 = vsel %vm5367_vm2, %v889_v23, %v890_v16  ;;  %v1918_v47 = vsel %vm5367_vm2, %v1916_v33, %v1917_v25  ;;  %v1922_v60 = vsel %vm5367_vm2, %v3819_v51, %v1921_v52  ;;  %v1923_v61 = vrot.slane %v1921_v52, 4  ;;  %v829_v23 = vld [vmem:[#allocation3 + $0x5c] sm:$0x1]  ;;  %v4855_v25 = vld [vmem:[%s6048_s3 + $0x170] sm:$0xff]  }
  0x93   : > { %4476 = vmatpush3.bf16.msra.mxu0 %v4845_v42  ;;  %4349 = vmatprep.subr.bf16.mxu1 %v4846_v1  ;;  %v3714_v39 = vcombine.low %v888_v38, %v891_v31  ;;  %v896_v42 = vrot.slane %v894_v30, 4  ;;  %v3842_v53 = vcombine.low %v1915_v32, %v1918_v47  ;;  %v1928_v16 = vrot.slane %v5506_v11, 5  ;;  %v828_v38 = vld [vmem:[#allocation3 + $0x54] sm:$0xe] }
  0x94   : > { %4477 = vmatprep.subr.bf16.mxu0 %v4847_v5  ;;  %v1925_v2 = vsel %vm5367_vm2, %v1923_v61, %v1924_v56  ;;  %v3693_v30 = vrot.slane %v828_v38, 9  ;;  %v910_v32 = vrot.slane %v908_v24, 4  ;;  %v911_v33 = vrot.slane %v829_v23, 5  ;;  %v782_v61 = vld [vmem:[#allocation3] sm:$0xf] }
  0x95   : > { %4334 = vmatmul.mubr.bf16.gmra.mrb[4].mxu1 %v3713_v9  ;;  %v898_v54 = vsel %vm5367_vm2, %v896_v42, %v897_v44  ;;  %v3843_v9 = vcombine.low %v1922_v60, %v1925_v2  ;;  %v1929_v27 = vsel %vm5367_vm2, %v3820_v13, %v1928_v16  ;;  %v1930_v29 = vrot.slane %v1928_v16, 4  ;;  %v1859_v44 = vld [vmem:[#allocation3 + $0x74] sm:$0x1] }
  0x96   : > { %4462 = vmatmul.mubr.bf16.gmra.mrb[4].mxu0 %v3841_v15  ;;  %4350 = vmatpush3.bf16.msra.mxu1 %v4846_v1  ;;  %v3715_v59 = vcombine.low %v895_v49, %v898_v54  ;;  %v826_v1 = vld [vmem:[#allocation3 + $0x48] sm:$0xe]  ;;  %v909_v42 = vsel %vm5367_vm2, %v3693_v30, %v908_v24  ;;  %v4856_v49 = vld [vmem:[%s6048_s3 + $0x38] sm:$0xff]   ;;  %v912_v51 = vsel %vm5367_vm2, %v910_v32, %v911_v33  ;;  %v1938_v52 = vrot.slane %v1859_v44, 5  ;;  %v788_v32 = vld [vmem:[#allocation3 + $0x24] sm:$0xf] }
  0x97   : > { %4478 = vmatpush3.bf16.msra.mxu0 %v4847_v5  ;;  %4351 = vmatprep.subr.bf16.mxu1 %v4848_v22  ;;  %v3692_v4 = vrot.slane %v826_v1, 9  ;;  %v901_v5 = vrot.slane %v5501_v0, 5  ;;  %v3717_v54 = vcombine.low %v909_v42, %v912_v51  ;;  %v2186_v60 = vrot.slane %v2184_v18, 4  ;;  %v786_v24 = vld [vmem:[#allocation3 + $0x18] sm:$0xf] }
  0x98   : > { %4479 = vmatprep.subr.bf16.mxu0 %v4849_v26  ;;  %4337 = vmatprep.mubr.bf16.mxu1 %v3714_v39  ;;  %v1932_v39 = vsel %vm5367_vm2, %v1930_v29, %v1931_v19  ;;  %v3726_v2 = vcombine.low %v782_v61, %v5362_v37  ;;  %v3728_v29 = vcombine.low %v786_v24, %v5412_v20  ;;  %v2156_v33 = vld [vmem:[#allocation3 + $0x3c] sm:$0xc]  ;;  %v2157_v42 = vld [vmem:[#allocation3 + $0x44] sm:$0x3]  ;;  %v2212_v61 = vrot.slane %v5460_v17, 6 }
  0x99   : > { %4465 = vmatprep.mubr.bf16.mxu0 %v3842_v53  ;;  %v902_v14 = vsel %vm5367_vm2, %v3692_v4, %v901_v5  ;;  %v903_v15 = vrot.slane %v901_v5, 4  ;;  %v3844_v50 = vcombine.low %v1929_v27, %v1932_v39  ;;  %v4857_v53 = vld [vmem:[%s6048_s3 + $0x178] sm:$0xff]   ;;  %v784_v5 = vld [vmem:[#allocation3 + $0xc] sm:$0xf]  ;;  %v2200_v39 = vrot.slane %v2198_v7, 4 }
  0x9a   : > { %4352 = vmatpush3.bf16.msra.mxu1 %v4848_v22  ;;  %v4854_v22 = vld [vmem:[%s6048_s3 + $0x30] sm:$0xff]   ;;  %v3727_v23 = vcombine.low %v784_v5, %v5377_v55  ;;  %v4862_v27 = vld [vmem:[%s6048_s3 + $0x88] sm:$0xff]   ;;  %v3857_v44 = vrot.slane %v2156_v33, 10  ;;  %v792_v5 = vld [vmem:[#allocation3 + $0x3c] sm:$0xf]  ;;  %v2219_v17 = vrot.slane %v5481_v46, 6 }
  0x9b   : > { %4480 = vmatpush3.bf16.msra.mxu0 %v4849_v26  ;;  %4353 = vmatprep.subr.bf16.mxu1 %v4850_v35  ;;  %v905_v26 = vsel %vm5367_vm2, %v903_v15, %v904_v10  ;;  %v4860_v10 = vld [vmem:[%s6048_s3 + $0x80] sm:$0xff]   ;;  %v2153_v15 = vld [vmem:[#allocation3 + $0x2c] sm:$0x3] }
  0x9c   : > { %4481 = vmatprep.subr.bf16.mxu0 %v4851_v58  ;;  %v3716_v31 = vcombine.low %v902_v14, %v905_v26  ;;  %v2152_v14 = vld [vmem:[#allocation3 + $0x24] sm:$0xc]  ;;  %v2155_v26 = vld [vmem:[#allocation3 + $0x38] sm:$0x3]  ;;  %v2162_v24 = vld [vmem:[#allocation3 + $0x60] sm:$0xc] }
  0x9d   : > { %4338 = vmatmul.mubr.bf16.gmra.mrb[8].mxu1 %v3715_v59  ;;  %v3855_v19 = vrot.slane %v2152_v14, 10 }
  0x9e   : > { %4466 = vmatmul.mubr.bf16.gmra.mrb[8].mxu0 %v3843_v9  ;;  %4354 = vmatpush3.bf16.msra.mxu1 %v4850_v35  ;;  %v5524_v35 = vld [vmem:[#allocation3 + $0x70] sm:$0xf]  ;;  %v2187_v9 = vrot.slane %v2151_v3, 6 }
  0x9f   : > { %4482 = vmatpush3.bf16.msra.mxu0 %v4851_v58  ;;  %4355 = vmatprep.subr.bf16.mxu1 %v4852_v62  ;;  %v1935_v47 = vrot.slane %v5524_v35, 5  ;;  %v2192_v48 = vsel %vm5543_vm5, %v3855_v19, %v2191_v40  ;;  %v4869_v19 = vld [vmem:[%s6048_s3 + $0x198] sm:$0xff]  }
  0xa0   : > { %4483 = vmatprep.subr.bf16.mxu0 %v4853_v63  ;;  %4341 = vmatprep.mubr.bf16.mxu1 %v3716_v31  ;;  %v2188_v16 = vsel %vm5543_vm5, %v2186_v60, %v2187_v9  ;;  %v2159_v60 = vld [vmem:[#allocation3 + $0x50] sm:$0x3] }
  0xa1   : > { %v1936_v56 = vsel %vm5367_vm2, %v3821_v45, %v1935_v47  ;;  %v1937_v58 = vrot.slane %v1935_v47, 4  ;;  %4469 = vmatprep.mubr.bf16.mxu0 %v3844_v50  ;;  %v2205_v45 = vrot.slane %v5438_v57, 6  ;;  %v2208_v47 = vrot.slane %v2157_v42, 6  ;;  %v4866_v50 = vld [vmem:[%s6048_s3 + $0x90] sm:$0xff]  }
  0xa2   : > { %4356 = vmatpush3.bf16.msra.mxu1 %v4852_v62  ;;  %v2150_v62 = vld [vmem:[#allocation3 + $0x18] sm:$0xc]  ;;  %v3729_v57 = vcombine.low %v788_v32, %v5427_v36  ;;  %v2165_v32 = vld [vmem:[#allocation3 + $0x74] sm:$0x3] }
  0xa3   : > { %4484 = vmatpush3.bf16.msra.mxu0 %v4853_v63  ;;  %4357 = vmatprep.subr.bf16.mxu1 %v4854_v22  ;;  %v2193_v63 = vrot.slane %v2191_v40, 4  ;;  %v1939_v1 = vsel %vm5367_vm2, %v1937_v58, %v1938_v52  ;;  %v3854_v4 = vrot.slane %v2150_v62, 10  ;;  %v2201_v40 = vrot.slane %v2155_v26, 6  ;;  %v2158_v58 = vld [vmem:[#allocation3 + $0x48] sm:$0xc]  ;;  %v4867_v62 = vld [vmem:[%s6048_s3 + $0x190] sm:$0xff]  }
  0xa4   : > { %4485 = vmatprep.subr.bf16.mxu0 %v4855_v25  ;;  %v3845_v8 = vcombine.low %v1936_v56, %v1939_v1  ;;  %v2207_v51 = vrot.slane %v2205_v45, 4  ;;  %v3858_v1 = vrot.slane %v2158_v58, 10  ;;  %v796_v42 = vld [vmem:[#allocation3 + $0x54] sm:$0xf] }
  0xa5   : > { %4342 = vmatmul.mubr.bf16.gmra.mrb[12].mxu1 %v3717_v54  ;;  %v2185_v13 = vsel %vm5543_vm5, %v3854_v4, %v2184_v18  ;;  %v2206_v54 = vsel %vm5543_vm5, %v3857_v44, %v2205_v45  ;;  %v2214_v4 = vrot.slane %v2212_v61, 4 }
  0xa6   : > { %4358 = vmatpush3.bf16.msra.mxu1 %v4854_v22  ;;  %4470 = vmatmul.mubr.bf16.gmra.mrb[12].mxu0 %v3845_v8  ;;  %v2194_v22 = vrot.slane %v2153_v15, 6  ;;  %v3878_v38 = vcombine.low %v2185_v13, %v2188_v16  ;;  %v2209_v56 = vsel %vm5543_vm5, %v2207_v51, %v2208_v47  ;;  %v2160_v8 = vld [vmem:[#allocation3 + $0x54] sm:$0xc]  ;;  %v2221_v15 = vrot.slane %v2219_v17, 4 }
  0xa7   : > { %4486 = vmatpush3.bf16.msra.mxu0 %v4855_v25  ;;  %4359 = vmatprep.subr.bf16.mxu1 %v4856_v49  ;;  %v2154_v25 = vld [vmem:[#allocation3 + $0x30] sm:$0xc]  ;;  %v3881_v9 = vcombine.low %v2206_v54, %v2209_v56  ;;  %v3859_v13 = vrot.slane %v2160_v8, 10  ;;  %v2236_v47 = vrot.slane %v2165_v32, 6  ;;  %v1329_v51 = vrot.slane %v5362_v37, 6  ;;  %v4887_v32 = vld [vmem:[%s6048_s3 + $0x1c8] sm:$0xff]  }
  0xa8   : > { %4487 = vmatprep.subr.bf16.mxu0 %v4857_v53  ;;  %4361 = vmatprep.mubr.bf16.mxu1 %v3726_v2  ;;  %v2195_v18 = vsel %vm5543_vm5, %v2193_v63, %v2194_v22  ;;  %v3856_v30 = vrot.slane %v2154_v25, 10  ;;  %v4868_v63 = vld [vmem:[%s6048_s3 + $0x98] sm:$0xff]   ;;  %v2215_v2 = vrot.slane %v2159_v60, 6  ;;  %v2226_v22 = vrot.slane %v5506_v11, 6  ;;  %v2163_v25 = vld [vmem:[#allocation3 + $0x68] sm:$0x3] }
  0xa9   : > { %4489 = vmatprep.mubr.bf16.mxu0 %v3878_v38  ;;  %v3879_v31 = vcombine.low %v2192_v48, %v2195_v18  ;;  %v1336_v38 = vrot.slane %v5377_v55, 6  ;;  %v794_v48 = vld [vmem:[#allocation3 + $0x48] sm:$0xf]  ;;  %v3731_v18 = vcombine.low %v792_v5, %v5468_v41  ;;  %v2220_v11 = vsel %vm5543_vm5, %v3859_v13, %v2219_v17  ;;  %v4879_v8 = vld [vmem:[%s6048_s3 + $0x1b0] sm:$0xff]   ;;  %v4880_v17 = vld [vmem:[%s6048_s3 + $0xb8] sm:$0xff]  }
  0xaa   : > { %4360 = vmatpush3.bf16.msra.mxu1 %v4856_v49  ;;  %v2199_v34 = vsel %vm5543_vm5, %v3856_v30, %v2198_v7  ;;  %v2202_v49 = vsel %vm5543_vm5, %v2200_v39, %v2201_v40  ;;  %v2216_v14 = vsel %vm5543_vm5, %v2214_v4, %v2215_v2  ;;  %v2228_v26 = vrot.slane %v2226_v22, 4  ;;  %v4873_v30 = vld [vmem:[%s6048_s3 + $0x1a0] sm:$0xff]   ;;  %v2164_v40 = vld [vmem:[#allocation3 + $0x6c] sm:$0xc]  ;;  %v1293_v54 = vld [vmem:[#allocation3 + $0x8] sm:$0x3] }
  0xab   : > { %4488 = vmatpush3.bf16.msra.mxu0 %v4857_v53  ;;  %4377 = vmatprep.subr.bf16.mxu1 %v4860_v10  ;;  %v3880_v52 = vcombine.low %v2199_v34, %v2202_v49  ;;  %v790_v53 = vld [vmem:[#allocation3 + $0x30] sm:$0xf]  ;;  %v3860_v7 = vrot.slane %v2162_v24, 10  ;;  %v3732_v33 = vcombine.low %v794_v48, %v5501_v0  ;;  %v3861_v44 = vrot.slane %v2164_v40, 10  ;;  %v4875_v49 = vld [vmem:[%s6048_s3 + $0x1a8] sm:$0xff]  }
  0xac   : > { %4505 = vmatprep.subr.bf16.mxu0 %v4861_v12  ;;  %v3730_v3 = vcombine.low %v790_v53, %v5455_v6  ;;  %v4878_v53 = vld [vmem:[%s6048_s3 + $0xb0] sm:$0xff]   ;;  %v1331_v58 = vrot.slane %v1329_v51, 4  ;;  %v1332_v60 = vrot.slane %v1293_v54, 6  ;;  %v3733_v37 = vcombine.low %v796_v42, %v5511_v21  ;;  %v1298_v24 = vld [vmem:[#allocation3 + $0x24] sm:$0xc] }
  0xad   : > { %4362 = vmatmul.mubr.bf16.vlgmr.msra.gmra.mrb[0].mxu1 %v3727_v23  ;;  %v4872_v23 = vld [vmem:[%s6048_s3 + $0xa0] sm:$0xff]   ;;  %v2227_v34 = vsel %vm5543_vm5, %v3860_v7, %v2226_v22  ;;  %v1295_v2 = vld [vmem:[#allocation3 + $0x14] sm:$0x3]  ;;  %v1296_v22 = vld [vmem:[#allocation3 + $0x18] sm:$0xc]  ;;  %v1371_v54 = vrot.slane %v5501_v0, 6 }
  0xae   : > { %4378 = vmatpush3.bf16.msra.mxu1 %v4860_v10  ;;  %4365 = vmatprep.mubr.bf16.mxu1 %v3728_v29  ;;  %v2213_v10 = vsel %vm5543_vm5, %v3858_v1, %v2212_v61  ;;  %v1343_v61 = vrot.slane %v5412_v20, 6  ;;  %v1294_v1 = vld [vmem:[#allocation3 + $0xc] sm:$0xc]  ;;  %v1333_v4 = vsel %vm5543_vm5, %v1331_v58, %v1332_v60  ;;  %v1339_v5 = vrot.slane %v1295_v2, 6  ;;  %v4882_v13 = vld [vmem:[#allocation3 + $0x30] sm:$0xff]   ;;  %v4894_v0 = vld [vmem:[#allocation3 + $0x60] sm:$0xff]  }
  0xaf   : > { %4379 = vmatprep.subr.bf16.mxu1 %v4862_v27  ;;  %4490 = vmatmul.mubr.bf16.vlgmr.msra.gmra.mrb[0].mxu0 %v3879_v31  ;;  %v3882_v46 = vcombine.low %v2213_v10, %v2216_v14  ;;  %v2229_v31 = vrot.slane %v2163_v25, 6  ;;  %v3743_v20 = vrot.slane %v1294_v1, 10  ;;  %v3744_v55 = vrot.slane %v1296_v22, 10  ;;  %v4889_v42 = vld [vmem:[%s6048_s3 + $0xd0] sm:$0xff]  }
  0xb0   : > { %4506 = vmatpush3.bf16.msra.mxu0 %v4861_v12  ;;  %4493 = vmatprep.mubr.bf16.mxu0 %v3880_v52  ;;  %v2161_v12 = vld [vmem:[#allocation3 + $0x5c] sm:$0x3]  ;;  %v1338_v52 = vrot.slane %v1336_v38, 4  ;;  %v1373_v1 = vrot.slane %v1371_v54, 4 }
  0xb1   : > { %4507 = vmatprep.subr.bf16.mxu0 %v4863_v28  ;;  %v2222_v16 = vrot.slane %v2161_v12, 6  ;;  %v2230_v39 = vsel %vm5543_vm5, %v2228_v26, %v2229_v31  ;;  %v4881_v12 = vld [vmem:[%s6048_s3 + $0x1b8] sm:$0xff]   ;;  %v1337_v14 = vsel %vm5543_vm5, %v3743_v20, %v1336_v38  ;;  %v1344_v25 = vsel %vm5543_vm5, %v3744_v55, %v1343_v61  ;;  %v4886_v31 = vld [vmem:[%s6048_s3 + $0xc8] sm:$0xff]  }
  0xb2   : > { %4380 = vmatpush3.bf16.msra.mxu1 %v4862_v27  ;;  %v2233_v27 = vrot.slane %v5524_v35, 6  ;;  %v4874_v35 = vld [vmem:[%s6048_s3 + $0xa8] sm:$0xff]   ;;  %v4900_v55 = vld [vmem:[#allocation3 + $0x78] sm:$0xff]  }
  0xb3   : > { %4381 = vmatprep.subr.bf16.mxu1 %v4866_v50  ;;  %v2223_v29 = vsel %vm5543_vm5, %v2221_v15, %v2222_v16  ;;  %v1340_v15 = vsel %vm5543_vm5, %v1338_v52, %v1339_v5  ;;  %v1345_v16 = vrot.slane %v1343_v61, 4  ;;  %v4891_v52 = vld [vmem:[%s6048_s3 + $0x1d0] sm:$0xff]   ;;  %v4892_v61 = vld [vmem:[%s6048_s3 + $0xd8] sm:$0xff]   ;;  %v1304_v20 = vld [vmem:[#allocation3 + $0x48] sm:$0xc] }
  0xb4   : > { %4508 = vmatpush3.bf16.msra.mxu0 %v4863_v28  ;;  %v3883_v45 = vcombine.low %v2220_v11, %v2223_v29  ;;  %v2235_v28 = vrot.slane %v2233_v27, 4  ;;  %v3767_v38 = vcombine.low %v1337_v14, %v1340_v15  ;;  %v1357_v11 = vrot.slane %v5455_v6, 6  ;;  %v4884_v29 = vld [vmem:[#allocation3 + $0x3c] sm:$0xff]   ;;  %v4888_v6 = vld [vmem:[#allocation3 + $0x48] sm:$0xff]   ;;  %v1305_v5 = vld [vmem:[#allocation3 + $0x50] sm:$0x3] }
  0xb5   : > { %4366 = vmatmul.mubr.bf16.gmra.mrb[4].mxu1 %v3729_v57  ;;  %4509 = vmatprep.subr.bf16.mxu0 %v4867_v62  ;;  %v1292_v57 = vld [vmem:[#allocation3] sm:$0xc] }
  0xb6   : > { %4382 = vmatpush3.bf16.msra.mxu1 %v4866_v50  ;;  %4369 = vmatprep.mubr.bf16.mxu1 %v3730_v3  ;;  %v3884_v50 = vcombine.low %v2227_v34, %v2230_v39  ;;  %v3742_v56 = vrot.slane %v1292_v57, 10 }
  0xb7   : > { %4383 = vmatprep.subr.bf16.mxu1 %v4868_v63  ;;  %4494 = vmatmul.mubr.bf16.gmra.mrb[4].mxu0 %v3881_v9 }
  0xb8   : > { %4510 = vmatpush3.bf16.msra.mxu0 %v4867_v62  ;;  %4497 = vmatprep.mubr.bf16.mxu0 %v3882_v46  ;;  %v2234_v62 = vsel %vm5543_vm5, %v3861_v44, %v2233_v27  ;;  %v1330_v3 = vsel %vm5543_vm5, %v3742_v56, %v1329_v51  ;;  %v4883_v46 = vld [vmem:[%s6048_s3 + $0xc0] sm:$0xff]   ;;  %v1300_v44 = vld [vmem:[#allocation3 + $0x30] sm:$0xc]  ;;  %v4890_v56 = vld [vmem:[#allocation3 + $0x54] sm:$0xff]  }
  0xb9   : > { %4511 = vmatprep.subr.bf16.mxu0 %v4869_v19  ;;  %v3766_v9 = vcombine.low %v1330_v3, %v1333_v4  ;;  %v4895_v4 = vld [vmem:[%s6048_s3 + $0xe0] sm:$0xff]  }
  0xba   : > { %4384 = vmatpush3.bf16.msra.mxu1 %v4868_v63  ;;  %v2237_v63 = vsel %vm5543_vm5, %v2235_v28, %v2236_v47  ;;  %v1302_v47 = vld [vmem:[#allocation3 + $0x3c] sm:$0xc] }
  0xbb   : > { %4385 = vmatprep.subr.bf16.mxu1 %v4872_v23  ;;  %v3885_v10 = vcombine.low %v2234_v62, %v2237_v63  ;;  %v3747_v58 = vrot.slane %v1302_v47, 10  ;;  %v4893_v62 = vld [vmem:[%s6048_s3 + $0x1d8] sm:$0xff]   ;;  %v1378_v63 = vrot.slane %v5511_v21, 6  ;;  %v3748_v21 = vrot.slane %v1304_v20, 10 }
  0xbc   : > { %4512 = vmatpush3.bf16.msra.mxu0 %v4869_v19  ;;  %v1350_v19 = vrot.slane %v5427_v36, 6  ;;  %v1299_v36 = vld [vmem:[#allocation3 + $0x2c] sm:$0x3] }
  0xbd   : > { %4370 = vmatmul.mubr.bf16.gmra.mrb[8].mxu1 %v3731_v18  ;;  %4513 = vmatprep.subr.bf16.mxu0 %v4873_v30  ;;  %v4885_v18 = vld [vmem:[%s6048_s3 + $0x1c0] sm:$0xff]   ;;  %v1353_v7 = vrot.slane %v1299_v36, 6  ;;  %v1380_v15 = vrot.slane %v1378_v63, 4  ;;  %v2691_v36 = vld [vmem:[#allocation3 + $0x30] sm:$0xe] }
  0xbe   : > { %4386 = vmatpush3.bf16.msra.mxu1 %v4872_v23  ;;  %4373 = vmatprep.mubr.bf16.mxu1 %v3732_v33  ;;  %v1297_v23 = vld [vmem:[#allocation3 + $0x20] sm:$0x3]  ;;  %v1352_v27 = vrot.slane %v1350_v19, 4  ;;  %v1359_v33 = vrot.slane %v1357_v11, 4 }
  0xbf   : > { %4387 = vmatprep.subr.bf16.mxu1 %v4874_v35  ;;  %4498 = vmatmul.mubr.bf16.gmra.mrb[8].mxu0 %v3883_v45  ;;  %v1346_v48 = vrot.slane %v1297_v23, 6  ;;  %v1301_v45 = vld [vmem:[#allocation3 + $0x38] sm:$0x3]  ;;  %v4896_v23 = vld [vmem:[#allocation3 + $0x6c] sm:$0xff]  }
  0xc0   : > { %4514 = vmatpush3.bf16.msra.mxu0 %v4873_v30  ;;  %4501 = vmatprep.mubr.bf16.mxu0 %v3884_v50  ;;  %v3745_v30 = vrot.slane %v1298_v24, 10  ;;  %v1354_v39 = vsel %vm5543_vm5, %v1352_v27, %v1353_v7  ;;  %v1360_v28 = vrot.slane %v1301_v45, 6  ;;  %v4901_v24 = vld [vmem:[%s6048_s3 + $0xf0] sm:$0xff]   ;;  %v3926_v27 = vrot.slane %v2691_v36, 9 }
  0xc1   : > { %4515 = vmatprep.subr.bf16.mxu0 %v4875_v49  ;;  %v1347_v26 = vsel %vm5543_vm5, %v1345_v16, %v1346_v48  ;;  %v4899_v48 = vld [vmem:[%s6048_s3 + $0x1e8] sm:$0xff]  }
  0xc2   : > { %4388 = vmatpush3.bf16.msra.mxu1 %v4874_v35  ;;  %v3768_v40 = vcombine.low %v1344_v25, %v1347_v26  ;;  %v1364_v35 = vrot.slane %v5468_v41, 6  ;;  %v1351_v34 = vsel %vm5543_vm5, %v3745_v30, %v1350_v19  ;;  %v3746_v41 = vrot.slane %v1300_v44, 10  ;;  %v5734_v25 = vld [vmem:[#allocation3 + $0x34] sm:$0xf]  ;;  %v2693_v26 = vld [vmem:[#allocation3 + $0x38] sm:$0x1] }
  0xc3   : > { %4389 = vmatprep.subr.bf16.mxu1 %v4878_v53  ;;  %v3769_v51 = vcombine.low %v1351_v34, %v1354_v39  ;;  %v1361_v57 = vsel %vm5543_vm5, %v1359_v33, %v1360_v28  ;;  %v4903_v30 = vld [vmem:[%s6048_s3 + $0x1f0] sm:$0xff]   ;;  %v2744_v7 = vrot.slane %v2693_v26, 5  ;;  %v5745_v33 = vld [vmem:[#allocation3 + $0x40] sm:$0xf]  ;;  %v2696_v34 = vld [vmem:[#allocation3 + $0x44] sm:$0x1] }
  0xc4   : > { %4516 = vmatpush3.bf16.msra.mxu0 %v4875_v49  ;;  %v1303_v49 = vld [vmem:[#allocation3 + $0x44] sm:$0x3]  ;;  %v1366_v50 = vrot.slane %v1364_v35, 4  ;;  %v1365_v2 = vsel %vm5543_vm5, %v3747_v58, %v1364_v35  ;;  %v4906_v39 = vld [vmem:[#allocation3 + $0x18] sm:$0xff]   ;;  %v2700_v58 = vld [vmem:[#allocation3 + $0x54] sm:$0xe] }
  0xc5   : > { %4374 = vmatmul.mubr.bf16.gmra.mrb[12].mxu1 %v3733_v37  ;;  %4517 = vmatprep.subr.bf16.mxu0 %v4879_v8  ;;  %v1367_v60 = vrot.slane %v1303_v49, 6  ;;  %v4905_v44 = vld [vmem:[%s6048_s3 + $0x1f8] sm:$0xff]   ;;  %v2751_v49 = vrot.slane %v2696_v34, 5 }
  0xc6   : > { %4390 = vmatpush3.bf16.msra.mxu1 %v4878_v53  ;;  %4393 = vmatprep.mubr.bf16.mxu1 %v3766_v9  ;;  %v1358_v53 = vsel %vm5543_vm5, %v3746_v41, %v1357_v11  ;;  %v1307_v9 = vld [vmem:[#allocation3 + $0x5c] sm:$0x3]  ;;  %v2741_v11 = vrot.slane %v5734_v25, 5 }
  0xc7   : > { %4391 = vmatprep.subr.bf16.mxu1 %v4880_v17  ;;  %4502 = vmatmul.mubr.bf16.gmra.mrb[12].mxu0 %v3885_v10  ;;  %v3770_v37 = vcombine.low %v1358_v53, %v1361_v57  ;;  %v1368_v3 = vsel %vm5543_vm5, %v1366_v50, %v1367_v60  ;;  %v1381_v19 = vrot.slane %v1307_v9, 6  ;;  %v4908_v50 = vld [vmem:[%s6048_s3 + $0x200] sm:$0xff]   ;;  %v2699_v53 = vld [vmem:[#allocation3 + $0x50] sm:$0x1] }
  0xc8   : > { %4518 = vmatpush3.bf16.msra.mxu0 %v4879_v8  ;;  %4521 = vmatprep.mubr.bf16.mxu0 %v4882_v13  ;;  %v1374_v8 = vrot.slane %v1305_v5, 6  ;;  %v3771_v10 = vcombine.low %v1365_v2, %v1368_v3  ;;  %v1372_v13 = vsel %vm5543_vm5, %v3748_v21, %v1371_v54  ;;  %v2742_v35 = vsel %vm5367_vm2, %v3926_v27, %v2741_v11  ;;  %v4907_v60 = vld [vmem:[#allocation3 + $0x24] sm:$0xff]  }
  0xc9   : > { %4519 = vmatprep.subr.bf16.mxu0 %v4881_v12  ;;  %v3929_v21 = vrot.slane %v2700_v58, 9 }
  0xca   : > { %4392 = vmatpush3.bf16.msra.mxu1 %v4880_v17  ;;  %v1306_v17 = vld [vmem:[#allocation3 + $0x54] sm:$0xc]  ;;  %v1375_v14 = vsel %vm5543_vm5, %v1373_v1, %v1374_v8  ;;  %v4909_v1 = vld [vmem:[%s6048_s3 + $0x208] sm:$0xff]  }
  0xcb   : > { %4409 = vmatprep.subr.bf16.mxu1 %v4883_v46  ;;  %v3749_v16 = vrot.slane %v1306_v17, 10  ;;  %v3772_v22 = vcombine.low %v1372_v13, %v1375_v14  ;;  %v2705_v13 = vld [vmem:[#allocation3 + $0x68] sm:$0x1] }
  0xcc   : > { %4520 = vmatpush3.bf16.msra.mxu0 %v4881_v12  ;;  %v4897_v12 = vld [vmem:[%s6048_s3 + $0x1e0] sm:$0xff]  }
  0xcd   : > { %4394 = vmatmul.mubr.bf16.vlgmr.msra.gmra.mrb[0].mxu1 %v3767_v38  ;;  %4537 = vmatprep.subr.bf16.mxu0 %v4885_v18  ;;  %v1379_v38 = vsel %vm5543_vm5, %v3749_v16, %v1378_v63  ;;  %v5763_v63 = vld [vmem:[#allocation3 + $0x58] sm:$0xf]  ;;  %v4912_v16 = vld [vmem:[%s6048_s3 + $0x210] sm:$0xff]  }
  0xce   : > { %4410 = vmatpush3.bf16.msra.mxu1 %v4883_v46  ;;  %4397 = vmatprep.mubr.bf16.mxu1 %v3768_v40  ;;  %v4898_v46 = vld [vmem:[%s6048_s3 + $0xe8] sm:$0xff]   ;;  %v2762_v3 = vrot.slane %v5763_v63, 5 }
  0xcf   : > { %4411 = vmatprep.subr.bf16.mxu1 %v4886_v31  ;;  %4522 = vmatmul.mubr.bf16.vlgmr.msra.gmra.mrb[0].mxu0 %v4884_v29  ;;  %v4902_v40 = vld [vmem:[#allocation3 + $0x84] sm:$0xff]  }
  0xd0   : > { %4538 = vmatpush3.bf16.msra.mxu0 %v4885_v18  ;;  %4525 = vmatprep.mubr.bf16.mxu0 %v4888_v6  ;;  %v1382_v18 = vsel %vm5543_vm5, %v1380_v15, %v1381_v19  ;;  %v2743_v6 = vrot.slane %v2741_v11, 4  ;;  %v2764_v17 = vrot.slane %v2762_v3, 4  ;;  %v2772_v19 = vrot.slane %v2705_v13, 5  ;;  %v4914_v11 = vld [vmem:[#allocation3 + $0x48] sm:$0xff]  }
  0xd1   : > { %4539 = vmatprep.subr.bf16.mxu0 %v4887_v32  ;;  %v3773_v29 = vcombine.low %v1379_v38, %v1382_v18  ;;  %v2763_v38 = vsel %vm5367_vm2, %v3929_v21, %v2762_v3  ;;  %v3046_v13 = vrot.slane %v5745_v33, 6 }
  0xd2   : > { %4412 = vmatpush3.bf16.msra.mxu1 %v4886_v31  ;;  %v2694_v31 = vld [vmem:[#allocation3 + $0x3c] sm:$0xe]  ;;  %v2745_v45 = vsel %vm5367_vm2, %v2743_v6, %v2744_v7  ;;  %v2711_v6 = vld [vmem:[#allocation3 + $0x80] sm:$0x1] }
  0xd3   : > { %4413 = vmatprep.subr.bf16.mxu1 %v4889_v42  ;;  %v3927_v41 = vrot.slane %v2694_v31, 9  ;;  %v3950_v28 = vcombine.low %v2742_v35, %v2745_v45  ;;  %v4916_v45 = vld [vmem:[%s6048_s3 + $0x220] sm:$0xff]  }
  0xd4   : > { %4540 = vmatpush3.bf16.msra.mxu0 %v4887_v32  ;;  %v4904_v32 = vld [vmem:[%s6048_s3 + $0xf8] sm:$0xff]  }
  0xd5   : > { %4398 = vmatmul.mubr.bf16.gmra.mrb[4].mxu1 %v3769_v51  ;;  %4541 = vmatprep.subr.bf16.mxu0 %v4891_v52  ;;  %v2697_v51 = vld [vmem:[#allocation3 + $0x48] sm:$0xe] }
  0xd6   : > { %4414 = vmatpush3.bf16.msra.mxu1 %v4889_v42  ;;  %4401 = vmatprep.mubr.bf16.mxu1 %v3770_v37  ;;  %v2748_v42 = vrot.slane %v5745_v33, 5  ;;  %v3928_v57 = vrot.slane %v2697_v51, 9  ;;  %v2712_v51 = vld [vmem:[#allocation3 + $0x84] sm:$0xe]  ;;  %v3007_v33 = vld [vmem:[#allocation3 + $0x3c] sm:$0xc] }
  0xd7   : > { %4415 = vmatprep.subr.bf16.mxu1 %v4892_v61  ;;  %4526 = vmatmul.mubr.bf16.gmra.mrb[4].mxu0 %v4890_v56  ;;  %v2758_v56 = vrot.slane %v2699_v53, 5  ;;  %v5809_v53 = vld [vmem:[%s6048_s3 + $0x228] sm:$0xff]   ;;  %v3933_v3 = vrot.slane %v2712_v51, 9 }
  0xd8   : > { %4542 = vmatpush3.bf16.msra.mxu0 %v4891_v52  ;;  %4529 = vmatprep.mubr.bf16.mxu0 %v4894_v0  ;;  %v2750_v47 = vrot.slane %v2748_v42, 4  ;;  %v5756_v52 = vld [vmem:[#allocation3 + $0x4c] sm:$0xf]  ;;  %v2702_v0 = vld [vmem:[#allocation3 + $0x5c] sm:$0x1] }
  0xd9   : > { %4543 = vmatprep.subr.bf16.mxu0 %v4893_v62  ;;  %v2755_v54 = vrot.slane %v5756_v52, 5  ;;  %v2765_v9 = vrot.slane %v2702_v0, 5  ;;  %v3006_v0 = vld [vmem:[#allocation3 + $0x38] sm:$0x3] }
  0xda   : > { %4416 = vmatpush3.bf16.msra.mxu1 %v4892_v61  ;;  %v2749_v61 = vsel %vm5367_vm2, %v3927_v41, %v2748_v42  ;;  %v2752_v37 = vsel %vm5367_vm2, %v2750_v47, %v2751_v49  ;;  %v2786_v42 = vrot.slane %v2711_v6, 5  ;;  %v3039_v47 = vrot.slane %v5734_v25, 6 }
  0xdb   : > { %4417 = vmatprep.subr.bf16.mxu1 %v4895_v4  ;;  %v2756_v2 = vsel %vm5367_vm2, %v3928_v57, %v2755_v54  ;;  %v3951_v5 = vcombine.low %v2749_v61, %v2752_v37  ;;  %v2766_v18 = vsel %vm5367_vm2, %v2764_v17, %v2765_v9  ;;  %v2714_v61 = vld [vmem:[#allocation3 + $0x8c] sm:$0x1]  ;;  %v3005_v37 = vld [vmem:[#allocation3 + $0x30] sm:$0xc]  ;;  %v3048_v6 = vrot.slane %v3046_v13, 4 }
  0xdc   : > { %4544 = vmatpush3.bf16.msra.mxu0 %v4893_v62  ;;  %v2757_v62 = vrot.slane %v2755_v54, 4  ;;  %v3953_v31 = vcombine.low %v2763_v38, %v2766_v18  ;;  %v2793_v17 = vrot.slane %v2714_v61, 5  ;;  %v3966_v9 = vrot.slane %v3005_v37, 10  ;;  %v4919_v38 = vld [vmem:[#allocation3 + $0x6c] sm:$0xff]   ;;  %v3011_v37 = vld [vmem:[#allocation3 + $0x54] sm:$0xc] }
  0xdd   : > { %4402 = vmatmul.mubr.bf16.gmra.mrb[8].mxu1 %v3771_v10  ;;  %4545 = vmatprep.subr.bf16.mxu0 %v4897_v12  ;;  %v2703_v10 = vld [vmem:[#allocation3 + $0x60] sm:$0xe] }
  0xde   : > { %4418 = vmatpush3.bf16.msra.mxu1 %v4895_v4  ;;  %4405 = vmatprep.mubr.bf16.mxu1 %v3772_v22  ;;  %v4910_v4 = vld [vmem:[#allocation3 + $0x30] sm:$0xff]   ;;  %v2759_v20 = vsel %vm5367_vm2, %v2757_v62, %v2758_v56  ;;  %v3930_v14 = vrot.slane %v2703_v10, 9  ;;  %v4918_v56 = vld [vmem:[#allocation3 + $0x60] sm:$0xff]   ;;  %v3041_v10 = vrot.slane %v3039_v47, 4 }
  0xdf   : > { %4419 = vmatprep.subr.bf16.mxu1 %v4898_v46  ;;  %4530 = vmatmul.mubr.bf16.gmra.mrb[8].mxu0 %v4896_v23  ;;  %v3952_v8 = vcombine.low %v2756_v2, %v2759_v20  ;;  %v5779_v23 = vld [vmem:[#allocation3 + $0x70] sm:$0xf]  ;;  %v3014_v2 = vld [vmem:[#allocation3 + $0x68] sm:$0x3] }
  0xe0   : > { %4546 = vmatpush3.bf16.msra.mxu0 %v4897_v12  ;;  %4533 = vmatprep.mubr.bf16.mxu0 %v4900_v55  ;;  %v5773_v12 = vld [vmem:[#allocation3 + $0x64] sm:$0xf]  ;;  %v2708_v55 = vld [vmem:[#allocation3 + $0x74] sm:$0x1]  ;;  %v2776_v36 = vrot.slane %v5779_v23, 5  ;;  %v3074_v25 = vrot.slane %v5779_v23, 6 }
  0xe1   : > { %4547 = vmatprep.subr.bf16.mxu0 %v4899_v48  ;;  %v2769_v15 = vrot.slane %v5773_v12, 5  ;;  %v2779_v7 = vrot.slane %v2708_v55, 5  ;;  %v3067_v54 = vrot.slane %v5773_v12, 6  ;;  %v3042_v12 = vrot.slane %v3006_v0, 6  ;;  %v3017_v55 = vld [vmem:[#allocation3 + $0x78] sm:$0xc] }
  0xe2   : > { %4420 = vmatpush3.bf16.msra.mxu1 %v4898_v46  ;;  %v2706_v46 = vld [vmem:[#allocation3 + $0x6c] sm:$0xe] }
  0xe3   : > { %4421 = vmatprep.subr.bf16.mxu1 %v4901_v24  ;;  %v2771_v22 = vrot.slane %v2769_v15, 4  ;;  %v2770_v26 = vsel %vm5367_vm2, %v3930_v14, %v2769_v15  ;;  %v3069_v20 = vrot.slane %v3067_v54, 4  ;;  %v3076_v14 = vrot.slane %v3074_v25, 4  ;;  %v4920_v15 = vld [vmem:[%s6048_s3 + $0x230] sm:$0xff]  }
  0xe4   : > { %4548 = vmatpush3.bf16.msra.mxu0 %v4899_v48  ;;  %v4911_v48 = vld [vmem:[#allocation3 + $0x3c] sm:$0xff]  }
  0xe5   : > { %4406 = vmatmul.mubr.bf16.gmra.mrb[12].mxu1 %v3773_v29  ;;  %4549 = vmatprep.subr.bf16.mxu0 %v4903_v30  ;;  %v2773_v27 = vsel %vm5367_vm2, %v2771_v22, %v2772_v19  ;;  %v3931_v29 = vrot.slane %v2706_v46, 9  ;;  %v3016_v19 = vld [vmem:[#allocation3 + $0x74] sm:$0x3] }
  0xe6   : > { %4422 = vmatpush3.bf16.msra.mxu1 %v4901_v24  ;;  %4425 = vmatprep.mubr.bf16.mxu1 %v4906_v39  ;;  %v4913_v24 = vld [vmem:[%s6048_s3 + $0x218] sm:$0xff]   ;;  %v3954_v35 = vcombine.low %v2770_v26, %v2773_v27  ;;  %v3008_v26 = vld [vmem:[#allocation3 + $0x44] sm:$0x3]  ;;  %v3009_v27 = vld [vmem:[#allocation3 + $0x48] sm:$0xc] }
  0xe7   : > { %4423 = vmatprep.subr.bf16.mxu1 %v4904_v32  ;;  %4534 = vmatmul.mubr.bf16.gmra.mrb[12].mxu0 %v4902_v40  ;;  %v2709_v40 = vld [vmem:[#allocation3 + $0x78] sm:$0xe]  ;;  %v2777_v49 = vsel %vm5367_vm2, %v3931_v29, %v2776_v36  ;;  %v3043_v29 = vsel %vm5543_vm5, %v3041_v10, %v3042_v12 }
  0xe8   : > { %4550 = vmatpush3.bf16.msra.mxu0 %v4903_v30  ;;  %4553 = vmatprep.mubr.bf16.mxu0 %v3950_v28  ;;  %v2778_v30 = vrot.slane %v2776_v36, 4  ;;  %v3932_v39 = vrot.slane %v2709_v40, 9  ;;  %v5799_v28 = vld [vmem:[#allocation3 + $0x88] sm:$0xf]  ;;  %v3040_v36 = vsel %vm5543_vm5, %v3966_v9, %v3039_v47  ;;  %v4921_v40 = vld [vmem:[%s6048_s3 + $0x238] sm:$0xff]   ;;  %v3968_v47 = vrot.slane %v3009_v27, 10 }
  0xe9   : > { %4551 = vmatprep.subr.bf16.mxu0 %v4905_v44  ;;  %v2790_v57 = vrot.slane %v5799_v28, 5 }
  0xea   : > { %4424 = vmatpush3.bf16.msra.mxu1 %v4904_v32  ;;  %v5793_v32 = vld [vmem:[#allocation3 + $0x7c] sm:$0xf] }
  0xeb   : > { %4601 = vmatprep.subr.bf16.mxu1 %v4908_v50  ;;  %v2783_v34 = vrot.slane %v5793_v32, 5  ;;  %v2791_v18 = vsel %vm5367_vm2, %v3933_v3, %v2790_v57  ;;  %v3081_v43 = vrot.slane %v5793_v32, 6 }
  0xec   : > { %4552 = vmatpush3.bf16.msra.mxu0 %v4905_v44  ;;  %v4915_v44 = vld [vmem:[#allocation3 + $0x54] sm:$0xff]  }
  0xed   : > { %4426 = vmatmul.mubr.bf16.vlgmr.msra.gmra.mrb[0].mxu1 %v4907_v60  ;;  %4569 = vmatprep.subr.bf16.mxu0 %v4908_v50  ;;  %v2785_v41 = vrot.slane %v2783_v34, 4  ;;  %v2784_v58 = vsel %vm5367_vm2, %v3932_v39, %v2783_v34 }
  0xee   : > { %4609 = vmatpush3.bf16.msra.mxu1 %v4908_v50  ;;  %4429 = vmatprep.mubr.bf16.mxu1 %v4910_v4 }
  0xef   : > { %4602 = vmatprep.subr.bf16.mxu1 %v4909_v1  ;;  %4554 = vmatmul.mubr.bf16.vlgmr.msra.gmra.mrb[0].mxu0 %v3951_v5  ;;  %v2787_v60 = vsel %vm5367_vm2, %v2785_v41, %v2786_v42  ;;  %v3070_v5 = vrot.slane %v3014_v2, 6  ;;  %v3967_v42 = vrot.slane %v3007_v33, 10  ;;  %v3990_v41 = vcombine.low %v3040_v36, %v3043_v29 }
  0xf0   : > { %4570 = vmatpush3.bf16.msra.mxu0 %v4908_v50  ;;  %4557 = vmatprep.mubr.bf16.mxu0 %v3952_v8  ;;  %v2780_v50 = vsel %vm5367_vm2, %v2778_v30, %v2779_v7  ;;  %v3956_v21 = vcombine.low %v2784_v58, %v2787_v60  ;;  %v2792_v8 = vrot.slane %v2790_v57, 4  ;;  %v3077_v7 = vrot.slane %v3016_v19, 6  ;;  %v3020_v58 = vld [vmem:[#allocation3 + $0x8c] sm:$0x3] }
  0xf1   : > { %4571 = vmatprep.subr.bf16.mxu0 %v4909_v1  ;;  %v3955_v62 = vcombine.low %v2777_v49, %v2780_v50  ;;  %v3071_v22 = vsel %vm5543_vm5, %v3069_v20, %v3070_v5  ;;  %v3088_v57 = vrot.slane %v5799_v28, 6  ;;  %v3047_v23 = vsel %vm5543_vm5, %v3967_v42, %v3046_v13 }
  0xf2   : > { %4610 = vmatpush3.bf16.msra.mxu1 %v4909_v1  ;;  %v3078_v51 = vsel %vm5543_vm5, %v3076_v14, %v3077_v7 }
  0xf3   : > { %4603 = vmatprep.subr.bf16.mxu1 %v4912_v16  ;;  %v3090_v3 = vrot.slane %v3088_v57, 4 }
  0xf4   : > { %4572 = vmatpush3.bf16.msra.mxu0 %v4909_v1  ;;  %v3013_v1 = vld [vmem:[#allocation3 + $0x60] sm:$0xc] }
  0xf5   : > { %4430 = vmatmul.mubr.bf16.gmra.mrb[4].mxu1 %v4911_v48  ;;  %4573 = vmatprep.subr.bf16.mxu0 %v4912_v16  ;;  %v3970_v4 = vrot.slane %v3013_v1, 10  ;;  %v3018_v48 = vld [vmem:[#allocation3 + $0x80] sm:$0x3]  ;;  %v3012_v1 = vld [vmem:[#allocation3 + $0x5c] sm:$0x3] }
  0xf6   : > { %4611 = vmatpush3.bf16.msra.mxu1 %v4912_v16  ;;  %4433 = vmatprep.mubr.bf16.mxu1 %v4914_v11  ;;  %v3053_v11 = vrot.slane %v5756_v52, 6  ;;  %v3972_v52 = vrot.slane %v3017_v55, 10  ;;  %v3084_v34 = vrot.slane %v3018_v48, 6 }
  0xf7   : > { %4604 = vmatprep.subr.bf16.mxu1 %v4913_v24  ;;  %4558 = vmatmul.mubr.bf16.gmra.mrb[4].mxu0 %v3953_v31  ;;  %v3068_v46 = vsel %vm5543_vm5, %v3970_v4, %v3067_v54  ;;  %v3010_v31 = vld [vmem:[#allocation3 + $0x50] sm:$0x3]  ;;  %v3091_v4 = vrot.slane %v3020_v58, 6 }
  0xf8   : > { %4574 = vmatpush3.bf16.msra.mxu0 %v4912_v16  ;;  %4561 = vmatprep.mubr.bf16.mxu0 %v3954_v35  ;;  %v3015_v16 = vld [vmem:[#allocation3 + $0x6c] sm:$0xc]  ;;  %v3994_v35 = vcombine.low %v3068_v46, %v3071_v22  ;;  %v3055_v49 = vrot.slane %v3053_v11, 4  ;;  %v3056_v32 = vrot.slane %v3010_v31, 6  ;;  %v3054_v60 = vsel %vm5543_vm5, %v3968_v47, %v3053_v11 }
  0xf9   : > { %4575 = vmatprep.subr.bf16.mxu0 %v4913_v24  ;;  %v3971_v30 = vrot.slane %v3015_v16, 10 }
  0xfa   : > { %4612 = vmatpush3.bf16.msra.mxu1 %v4913_v24  ;;  %v3057_v61 = vsel %vm5543_vm5, %v3055_v49, %v3056_v32 }
  0xfb   : > { %4605 = vmatprep.subr.bf16.mxu1 %v4916_v45  ;;  %v3075_v50 = vsel %vm5543_vm5, %v3971_v30, %v3074_v25  ;;  %v3992_v5 = vcombine.low %v3054_v60, %v3057_v61 }
  0xfc   : > { %4576 = vmatpush3.bf16.msra.mxu0 %v4913_v24  ;;  %v2794_v24 = vsel %vm5367_vm2, %v2792_v8, %v2793_v17  ;;  %v3995_v28 = vcombine.low %v3075_v50, %v3078_v51  ;;  %v3063_v17 = vrot.slane %v3012_v1, 6  ;;  %v5884_v51 = vld [vmem:[%s6049_s4] ss:$0 sm:$0xff] }
  0xfd   : > { %4434 = vmatmul.mubr.bf16.gmra.mrb[8].mxu1 %v4915_v44  ;;  %4577 = vmatprep.subr.bf16.mxu0 %v4916_v45  ;;  %v3957_v39 = vcombine.low %v2791_v18, %v2794_v24  ;;  %v3049_v44 = vrot.slane %v3008_v26, 6 }
  0xfe   : > { %4613 = vmatpush3.bf16.msra.mxu1 %v4916_v45  ;;  %4437 = vmatprep.mubr.bf16.mxu1 %v4918_v56  ;;  %v3019_v56 = vld [vmem:[#allocation3 + $0x84] sm:$0xc] }
  0xff   : > { %4606 = vmatprep.subr.bf16.mxu1 %v5809_v53  ;;  %4562 = vmatmul.mubr.bf16.gmra.mrb[8].mxu0 %v3955_v62  ;;  %v3050_v25 = vsel %vm5543_vm5, %v3048_v6, %v3049_v44  ;;  %v3060_v62 = vrot.slane %v5763_v63, 6  ;;  %v3973_v2 = vrot.slane %v3019_v56, 10  ;;  %v3092_v63 = vsel %vm5543_vm5, %v3090_v3, %v3091_v4 }
 0x100   : > { %4578 = vmatpush3.bf16.msra.mxu0 %v4916_v45  ;;  %4565 = vmatprep.mubr.bf16.mxu0 %v3956_v21  ;;  %v3083_v45 = vrot.slane %v3081_v43, 4  ;;  %v3991_v20 = vcombine.low %v3047_v23, %v3050_v25  ;;  %v3969_v21 = vrot.slane %v3011_v37, 10 }
 0x101   : > { %4579 = vmatprep.subr.bf16.mxu0 %v5809_v53  ;;  %v3062_v8 = vrot.slane %v3060_v62, 4  ;;  %v3089_v9 = vsel %vm5543_vm5, %v3973_v2, %v3088_v57 }
 0x102   : > { %4614 = vmatpush3.bf16.msra.mxu1 %v5809_v53  ;;  %v3085_v54 = vsel %vm5543_vm5, %v3083_v45, %v3084_v34  ;;  %v3061_v10 = vsel %vm5543_vm5, %v3969_v21, %v3060_v62  ;;  %v3997_v13 = vcombine.low %v3089_v9, %v3092_v63 }
 0x103   : > { %4607 = vmatprep.subr.bf16.mxu1 %v4920_v15  ;;  %v3064_v12 = vsel %vm5543_vm5, %v3062_v8, %v3063_v17 }
 0x104   : > { %4580 = vmatpush3.bf16.msra.mxu0 %v5809_v53  ;;  %v3082_v53 = vsel %vm5543_vm5, %v3972_v52, %v3081_v43  ;;  %v3993_v14 = vcombine.low %v3061_v10, %v3064_v12 }
 0x105   : > { %4438 = vmatmul.mubr.bf16.gmra.mrb[12].mxu1 %v4919_v38  ;;  %4581 = vmatprep.subr.bf16.mxu0 %v4920_v15  ;;  %v3996_v0 = vcombine.low %v3082_v53, %v3085_v54 }
 0x106   : > { %4615 = vmatpush3.bf16.msra.mxu1 %v4920_v15  ;;  %4593 = vmatprep.mubr.bf16.mxu1 %v3994_v35 }
 0x107   : > { %4608 = vmatprep.subr.bf16.mxu1 %v4921_v40  ;;  %4566 = vmatmul.mubr.bf16.gmra.mrb[12].mxu0 %v3957_v39 }
 0x108   : > { %4582 = vmatpush3.bf16.msra.mxu0 %v4920_v15  ;;  %4585 = vmatprep.mubr.bf16.mxu0 %v3990_v41 }
 0x109   : > { %4583 = vmatprep.subr.bf16.mxu0 %v4921_v40 }
 0x10a   : > { %4616 = vmatpush3.bf16.msra.mxu1 %v4921_v40 }
 0x10c   : > { %4584 = vmatpush3.bf16.msra.mxu0 %v4921_v40 }
 0x10d   : > { %4594 = vmatmul.mubr.bf16.vlgmr.msra.gmra.mrb[16].mxu1 %v3995_v28 }
 0x10e   : > { %4597 = vmatprep.mubr.bf16.mxu1 %v3996_v0 }
 0x10f   : > { %4586 = vmatmul.mubr.bf16.vlgmr.msra.gmra.mrb[0].mxu0 %v3991_v20 }
 0x110   : > { %4589 = vmatprep.mubr.bf16.mxu0 %v3992_v5 }
 0x115   : > { %4598 = vmatmul.mubr.bf16.gmra.mrb[20].mxu1 %v3997_v13 }
 0x117   : > { %4590 = vmatmul.mubr.bf16.gmra.mrb[4].mxu0 %v3993_v14 }
 0x1c0   : > { %v4427_v15 = vpop.f32.mrb[0].mxu1 }
 0x1c1   : > { %v1757_v16 = vpop.f32.mrb[1].mxu1 }
 0x1c2   : > { %v4428_v19 = vpop.f32.mrb[2].mxu1 }
 0x1c3   : > { %v1760_v46 = vpop.f32.mrb[3].mxu1 }
 0x1c8   : > { %v5873_v22 = vpop.f32.mrb[4].mxu1 }
 0x1c9   : > { %v5875_v33 = vpop.f32.mrb[5].mxu1 }
 0x1ca   : > { %v5877_v55 = vpop.f32.mrb[6].mxu1 }
 0x1cb   : > { %v5879_v48 = vpop.f32.mrb[7].mxu1 }
 0x1d0   : > { %v4435_v38 = vpop.f32.mrb[8].mxu1 }
 0x1d1   : > { %v1789_v18 = vpop.f32.mrb[9].mxu1 }
 0x1d2   : > { %v4436_v59 = vpop.f32.mrb[10].mxu1  ;;  %v4563_v24 = vpop.f32.mrb[8].mxu0 }
 0x1d3   : > { %v1792_v36 = vpop.f32.mrb[11].mxu1  ;;  %v4625_v26 = vadd.f32 %v4563_v24, %v4435_v38  ;;  %v2958_v27 = vpop.f32.mrb[9].mxu0 }
 0x1d4   : > { %v4627_v11 = vadd.f32 %v2958_v27, %v1789_v18  ;;  %v4564_v29 = vpop.f32.mrb[10].mxu0 }
 0x1d5   : > { %v4629_v30 = vadd.f32 %v4564_v29, %v4436_v59  ;;  %v2961_v7 = vpop.f32.mrb[11].mxu0 }
 0x1d6   : > { %v4631_v31 = vadd.f32 %v2961_v7, %v1792_v36 }
 0x1d8   : > { %v4439_v43 = vpop.f32.mrb[12].mxu1 }
 0x1d9   : > { %v1805_v40 = vpop.f32.mrb[13].mxu1 }
 0x1da   : > { %v4440_v35 = vpop.f32.mrb[14].mxu1  ;;  %v4567_v6 = vpop.f32.mrb[12].mxu0 }
 0x1db   : > { %v1808_v52 = vpop.f32.mrb[15].mxu1  ;;  %v4633_v34 = vadd.f32 %v4567_v6, %v4439_v43  ;;  %v2974_v39 = vpop.f32.mrb[13].mxu0 }
 0x1dc   : > { %v4635_v42 = vadd.f32 %v2974_v39, %v1805_v40  ;;  %v4568_v44 = vpop.f32.mrb[14].mxu0 }
 0x1dd   : > { %v4637_v45 = vadd.f32 %v4568_v44, %v4440_v35  ;;  %v2977_v41 = vpop.f32.mrb[15].mxu0 }
 0x1de   : > { %v4639_v47 = vadd.f32 %v2977_v41, %v1808_v52 }
 0x1e0   : > { %v4595_v49 = vpop.f32.mrb[16].mxu1 }
 0x1e1   : > { %v4626_v32 = vadd.f32 %v4625_v26, %v4595_v49  ;;  %v3256_v50 = vpop.f32.mrb[17].mxu1 }
 0x1e2   : > { %v4628_v57 = vadd.f32 %v4627_v11, %v3256_v50  ;;  %v4596_v53 = vpop.f32.mrb[18].mxu1  ;;  %v4587_v54 = vpop.f32.mrb[0].mxu0 }
 0x1e3   : > { %v4630_v56 = vadd.f32 %v4629_v30, %v4596_v53  ;;  %v3259_v58 = vpop.f32.mrb[19].mxu1  ;;  %v4617_v23 = vadd.f32 %v4587_v54, %v4427_v15  ;;  %v3224_v25 = vpop.f32.mrb[1].mxu0  ;;  %v5887_v60 = vadd.f32 %v4626_v32, %v5884_v51 }
 0x1e4   : > { %v4632_v28 = vadd.f32 %v4631_v31, %v3259_v58  ;;  %v4618_v61 = vadd.f32 %v3224_v25, %v1757_v16  ;;  %v4588_v37 = vpop.f32.mrb[2].mxu0  ;;  %v5893_v0 = vadd.f32 %v4628_v57, %v5884_v51 }
 0x1e5   : > { %v5890_v62 = vadd.f32 %v4630_v56, %v5884_v51  ;;  %v4619_v1 = vadd.f32 %v4588_v37, %v4428_v19  ;;  %v3227_v2 = vpop.f32.mrb[3].mxu0  ;;  %v3312_v21 = vadd.f32 %v4617_v23, %v5884_v51 }
 0x1e6   : > { %v5896_v3 = vadd.f32 %v4632_v28, %v5884_v51  ;;  %v3310_v4 = vadd.f32 %v4618_v61, %v5884_v51  ;;  %v4620_v5 = vadd.f32 %v3227_v2, %v1760_v46 }
 0x1e7   : > { %v4145_v20 = vpack.c.bf16 %v5890_v62, %v5887_v60  ;;  %v3313_v8 = vadd.f32 %v4619_v1, %v5884_v51  ;;  %v3429_v11 = vmul.f32 %v3312_v21, %v3312_v21 }
 0x1e8   : > { %v4140_v17 = vpack.c.bf16 %v5896_v3, %v5893_v0  ;;  %v4599_v9 = vpop.f32.mrb[20].mxu1  ;;  %v3311_v63 = vadd.f32 %v4620_v5, %v5884_v51  ;;  %v3427_v16 = vmul.f32 %v3310_v4, %v3310_v4 }
 0x1e9   : > { %4166 = vst [vmem:[%s5215_s8 + $0x28] sm:$0xff] %v4145_v20   ;;  %v4634_v10 = vadd.f32 %v4633_v34, %v4599_v9  ;;  %v3272_v12 = vpop.f32.mrb[21].mxu1  ;;  %v4125_v13 = vpack.c.bf16 %v3313_v8, %v3312_v21  ;;  %v3430_v43 = vmul.f32 %v3313_v8, %v3313_v8 }
 0x1ea   : > { %4165 = vst [vmem:[%s5215_s8 + $0x20] sm:$0xff] %v4140_v17   ;;  %v4636_v14 = vadd.f32 %v4635_v42, %v3272_v12  ;;  %v4600_v15 = vpop.f32.mrb[22].mxu1  ;;  %v4120_v19 = vpack.c.bf16 %v3311_v63, %v3310_v4  ;;  %v3406_v46 = vadd.f32 %v3311_v63, %v3310_v4  ;;  %v3428_v38 = vmul.f32 %v3311_v63, %v3311_v63  ;;  %v4591_v18 = vpop.f32.mrb[4].mxu0 }
 0x1eb   : > { %v3275_v59 = vpop.f32.mrb[23].mxu1  ;;  %4162 = vst [vmem:[%s5215_s8 + $0x8] sm:$0xff] %v4125_v13   ;;  %v4621_v24 = vadd.f32 %v4591_v18, %v5873_v22  ;;  %v3240_v36 = vpop.f32.mrb[5].mxu0  ;;  %v4638_v26 = vadd.f32 %v4637_v45, %v4600_v15  ;;  %v5915_v40 = vadd.f32 %v4634_v10, %v5884_v51 }
 0x1ec   : > { %v4640_v27 = vadd.f32 %v4639_v47, %v3275_v59  ;;  %4121 = vst [vmem:[%s5215_s8] sm:$0xff] %v4120_v19   ;;  %v3407_v29 = vadd.f32 %v3406_v46, %v3312_v21  ;;  %v3443_v30 = vadd.f32 %v3428_v38, %v3427_v16  ;;  %v4622_v7 = vadd.f32 %v3240_v36, %v5875_v33  ;;  %v4592_v31 = vpop.f32.mrb[6].mxu0 }
 0x1ed   : > { %v4623_v35 = vadd.f32 %v4592_v31, %v5877_v55  ;;  %v5919_v6 = vadd.f32 %v4638_v26, %v5884_v51  ;;  %v3243_v22 = vpop.f32.mrb[7].mxu0  ;;  %v3316_v33 = vadd.f32 %v4621_v24, %v5884_v51  ;;  %v3322_v32 = vadd.f32 %v4636_v14, %v5884_v51 }
 0x1ee   : > { %v3444_v52 = vadd.f32 %v3443_v30, %v3429_v11  ;;  %v3314_v34 = vadd.f32 %v4622_v7, %v5884_v51  ;;  %v3408_v39 = vadd.f32 %v3407_v29, %v3313_v8  ;;  %v4624_v42 = vadd.f32 %v3243_v22, %v5879_v48 }
 0x1ef   : > { %v3317_v44 = vadd.f32 %v4623_v35, %v5884_v51  ;;  %v4155_v45 = vpack.c.bf16 %v5919_v6, %v5915_v40  ;;  %v3323_v50 = vadd.f32 %v4640_v27, %v5884_v51  ;;  %v3433_v23 = vmul.f32 %v3316_v33, %v3316_v33 }
 0x1f0   : > { %v3409_v55 = vadd.f32 %v3408_v39, %v3314_v34  ;;  %v3431_v41 = vmul.f32 %v3314_v34, %v3314_v34  ;;  %v3445_v47 = vadd.f32 %v3444_v52, %v3430_v43  ;;  %v3315_v49 = vadd.f32 %v4624_v42, %v5884_v51 }
 0x1f1   : > { %v4135_v48 = vpack.c.bf16 %v3317_v44, %v3316_v33  ;;  %4168 = vst [vmem:[%s5215_s8 + $0x38] sm:$0xff] %v4155_v45   ;;  %v4150_v58 = vpack.c.bf16 %v3323_v50, %v3322_v32  ;;  %v3434_v28 = vmul.f32 %v3317_v44, %v3317_v44 }
 0x1f2   : > { %v3446_v57 = vadd.f32 %v3445_v47, %v3431_v41  ;;  %v4130_v53 = vpack.c.bf16 %v3315_v49, %v3314_v34  ;;  %v3410_v54 = vadd.f32 %v3409_v55, %v3315_v49  ;;  %v3432_v56 = vmul.f32 %v3315_v49, %v3315_v49 }
 0x1f3   : > { %4164 = vst [vmem:[%s5215_s8 + $0x18] sm:$0xff] %v4135_v48   ;;  %4167 = vst [vmem:[%s5215_s8 + $0x30] sm:$0xff] %v4150_v58  }
 0x1f4   : > { %4163 = vst [vmem:[%s5215_s8 + $0x10] sm:$0xff] %v4130_v53   ;;  %v3411_v51 = vadd.f32 %v3410_v54, %v3316_v33  ;;  %v3447_v25 = vadd.f32 %v3446_v57, %v3432_v56 }
 0x1f6   : > { %v3412_v61 = vadd.f32 %v3411_v51, %v3317_v44  ;;  %v3448_v37 = vadd.f32 %v3447_v25, %v3433_v23 }
 0x1f7   : > { %4935 = shalt.err (!%p4932_p7)
}
 0x1f8   : > { %s4936_s8 = scalar_lea.hbm %s5938_s19, 1024  ;;  %s4940_s30 = scalar_lea.hbm %s6050_s5, 4096 }
 0x1f9   : > { %p4937_p9 = scmp.ne.s32.totalorder %s5938_s19, %s4936_s8  ;;  %p4941_p12 = scmp.lt.u32.totalorder %s5938_s19, %s6050_s5 }
 0x1fa   : > { %p4942_p13 = scmp.lt.u32.totalorder %s4940_s30, %s4936_s8  ;;  %p4944_p1 = scmp.lt.u32.totalorder %s4936_s8, %s5938_s19 }
 0x1fb   : > { %p4938_p10 = pnand %p4937_p9, %p5145_p3 }
 0x1fc   : > { %p4943_p0 = por %p4942_p13, %p4941_p12 }
 0x1fd   : > { %p4939_p11 = pneg %p4938_p10 }
 0x1fe   : > { %p4945_p2 = por %p4944_p1, %p4943_p0 }
 0x200   : > { %p4946_p4 = pnand %p4945_p2, %p4939_p11 }
 0x202   : > { %4949 = shalt.err (!%p4946_p4)
}
 0x203   : > { %s5056_s29 = smov 64   ;;  %s5057_s14 = smov 4   ;;  %v3435_v1 = vmul.f32 %v5893_v0, %v5893_v0  ;;  %v3413_v2 = vadd.f32 %v3412_v61, %v5893_v0  ;;  %v3449_v4 = vadd.f32 %v3448_v37, %v3434_v28  ;;  %v3436_v20 = vmul.f32 %v5896_v3, %v5896_v3 }
 0x204   : > { %s6062_s0 = scalar_lea.sflag [#allocation6], %s5166_s16  ;;  %v3437_v8 = vmul.f32 %v5887_v60, %v5887_v60  ;;  %v3438_v63 = vmul.f32 %v5890_v62, %v5890_v62  ;;  %v3439_v0 = vmul.f32 %v3322_v32, %v3322_v32  ;;  %v3440_v16 = vmul.f32 %v3323_v50, %v3323_v50  ;;  %s3507_s20 = sshll.u32 %s5219_s12, 4  ;;  %s5992_s20 = int_to_ptr.vmem [resolvable:$true] %s3507_s20 }
 0x205   : > { %4745 = dma.vmem_to_hbm [thread:$0]  (%p5145_p3), %s5932_s13, 1024, %s5938_s19, %s6062_s0, %s5056_s29, %s5056_s29, %s5057_s14   ;;  %v3450_v5 = vadd.f32 %v3449_v4, %v3435_v1  ;;  %v3414_v21 = vadd.f32 %v3413_v2, %v5896_v3  ;;  %v3441_v3 = vmul.f32 %v5915_v40, %v5915_v40  ;;  %v3442_v38 = vmul.f32 %v5919_v6, %v5919_v6 }
 0x206   : > { %s4029_s0 = sshll.u32 %s5038_s25, 1  ;;  %vm3464_vm6 = vcmask 1040384   ;;  %s4950_s25 = scalar_lea.vmem %s5992_s20, 32 }
 0x207   : > { %v3415_v17 = vadd.f32 %v3414_v21, %v5887_v60  ;;  %v3451_v9 = vadd.f32 %v3450_v5, %v3436_v20  ;;  %s3503_s13 = sadd.s32 %s5034_s24, %s4029_s0  ;;  %s3473_s24 = scalar_lea.sflag [#allocation8], %s5166_s16 }
 0x208   : > { %s4030_s19 = sshll.u32 %s3503_s13, 5  ;;  %p4951_p5 = scmp.ne.s32.totalorder %s5992_s20, %s4950_s25 }
 0x209   : > { %v3416_v10 = vadd.f32 %v3415_v17, %v5890_v62  ;;  %v3452_v12 = vadd.f32 %v3451_v9, %v3437_v8  ;;  %s5990_s18 = scalar_lea.hbm %s6051_s6, %s4030_s19  ;;  %s5058_s30 = smov [#allocation7]  }
 0x20a   : > { %p4952_p6 = pnand %p4951_p5, %p5145_p3  ;;  %s4954_s9 = sshll.u32 %s5058_s30, 4  ;;  %s4955_s9 = int_to_ptr.vmem [resolvable:$false] %s4954_s9 }
 0x20b   : > { %v3417_v13 = vadd.f32 %v3416_v10, %v3322_v32  ;;  %v3453_v14 = vadd.f32 %v3452_v12, %v3438_v63  ;;  %s4956_s29 = scalar_lea.vmem %s4955_s9, 64  ;;  %p4957_p9 = scmp.lt.s32.totalorder %s5992_s20, %s4955_s9 }
 0x20c   : > { %p4953_p7 = pneg %p4952_p6  ;;  %p4958_p10 = scmp.lt.s32.totalorder %s4956_s29, %s4950_s25 }
 0x20d   : > { %v3418_v15 = vadd.f32 %v3417_v13, %v3323_v50  ;;  %v3454_v19 = vadd.f32 %v3453_v14, %v3439_v0 }
 0x20e   : > { %p4959_p11 = por %p4958_p10, %p4957_p9 }
 0x20f   : > { %v3419_v60 = vadd.f32 %v3418_v15, %v5915_v40  ;;  %v3455_v46 = vadd.f32 %v3454_v19, %v3440_v16 }
 0x210   : > { %p4960_p12 = pnand %p4959_p11, %p4953_p7 }
 0x211   : > { %v3420_v62 = vadd.f32 %v3419_v60, %v5919_v6  ;;  %v3456_v18 = vadd.f32 %v3455_v46, %v3441_v3 }
 0x213   : > { %v3421_v59 = vrot.slane %v3420_v62, 4  ;;  %v3457_v24 = vadd.f32 %v3456_v18, %v3442_v38 }
 0x215   : > { %v3422_v36 = vadd.f32 %v3421_v59, %v3420_v62  ;;  %v3458_v26 = vrot.slane %v3457_v24, 4 }
 0x217   : > { %v3423_v27 = vrot.slane %v3422_v36, 2  ;;  %v3459_v11 = vadd.f32 %v3458_v26, %v3457_v24 }
 0x219   : > { %v3424_v29 = vadd.f32 %v3423_v27, %v3422_v36  ;;  %v3460_v30 = vrot.slane %v3459_v11, 2 }
 0x21b   : > { %v3425_v7 = vrot.slane %v3424_v29, 1  ;;  %v3461_v31 = vadd.f32 %v3460_v30, %v3459_v11 }
 0x21d   : > { %v3462_v43 = vrot.slane %v3461_v31, 1  ;;  %v3426_v40 = vadd.f32 %v3425_v7, %v3424_v29 }
 0x21f   : > { %v3463_v35 = vadd.f32 %v3462_v43, %v3461_v31 }
 0x221   : > { %v3465_v6 = vsel %vm3464_vm6, %v3426_v40, %v3463_v35 }
 0x222   : > { %3466 = vst [vmem:[%s5219_s12] sm:$0x3] %v3465_v6 }
 0x223   : > { %4963 = shalt.err (!%p4960_p12)
}
 0x224   : > { %s4964_s16 = scalar_lea.hbm %s5990_s18, 32  ;;  %s4968_s0 = scalar_lea.hbm %s6051_s6, 128 }
 0x225   : > { %p4965_p13 = scmp.ne.s32.totalorder %s5990_s18, %s4964_s16  ;;  %p4969_p2 = scmp.lt.u32.totalorder %s5990_s18, %s6051_s6 }
 0x226   : > { %p4970_p4 = scmp.lt.u32.totalorder %s4968_s0, %s4964_s16  ;;  %p4972_p6 = scmp.lt.u32.totalorder %s4964_s16, %s5990_s18 }
 0x227   : > { %p4966_p0 = pnand %p4965_p13, %p5145_p3 }
 0x228   : > { %p4971_p5 = por %p4970_p4, %p4969_p2 }
 0x229   : > { %p4967_p1 = pneg %p4966_p0 }
 0x22a   : > { %p4973_p7 = por %p4972_p6, %p4971_p5 }
 0x22c   : > { %p4974_p9 = pnand %p4973_p7, %p4967_p1 }
 0x22e   : > { %4977 = shalt.err (!%p4974_p9)
}
 0x22f   : > { %4746 = dma.vmem_to_hbm [thread:$0]  (%p5145_p3), %s5992_s20, 32, %s5990_s18, %s3473_s24  }
 0x230 PF: > { %p4756_p10 = scmp.ge.s32.totalorder %s5050_s28, 2  ;;  %s3519_s8 = sand.u32 1, %s5022_s21  }
 0x231   : > { %s3520_s17 = scalar_lea.sflag [#allocation6], %s3519_s8 }
 0x232   : > { %p4750_p11 = pnand %p4756_p10, %p5154_p8 }
 0x234   : > { %5013 = dma.done.wait (!%p4750_p11), %s3520_s17, 1024  }
 0x235   : > { %5015 = vsyncadd (!%p4750_p11), %s3520_s17, 4294966272  ;;  %s3529_s25 = scalar_lea.sflag [#allocation8], %s3519_s8 }
 0x236   : > { %5017 = dma.done.wait (!%p4750_p11), %s3529_s25, 32  }
 0x237   : > { %5019 = vsyncadd (!%p4750_p11), %s3529_s25, 4294967264  ;;  %s23_s28 = sadd.s32 1, %s5050_s28   ;;  %s6063_s10 = sld [smem:[#allocation13_spill]] }
 0x238   : > { %p20_p12 = scmp.ge.s32.totalorder %s23_s28, 6   ;;  %s6064_s21 = smov %s5026_s22 }
 0x239   : > { %s6065_s22 = smov %s5030_s23  ;;  %s6066_s23 = smov %s5163_s15 }
 0x23a   : > { %s6067_s24 = smov %s5042_s26  ;;  %s6068_s25 = smov %s5046_s27 }
 0x23b   : > { %s6069_s26 = smov %s6072_s7  ;;  %22 = sbr.rel (!%p20_p12) target bundleno = 9 (0x9), region = 156 }
 0x23d   : > { %s6070_s27 = smov %s6063_s10 }
 0x242   :  { %3534 = vsyncpa [#allocation6], 1 }
 0x243   :  { %3536 = vsyncpa [#allocation6 + $0x1], 1 }
 0x244   :  { %3537 = vsyncpa [#allocation8], 1 }
 0x245   :  { %3539 = vsyncpa [#allocation8 + $0x1], 1 }
 0x246   :  { %3540 = vsyncmov [#allocation4] }
 0x249   :  { %s3541_s11 = vpop.sfrf %3540 }
 0x24a   :  { %p4033_p3 = scmp.ne.s32.totalorder %s3541_s11, 0 }
 0x24c   :  { %3545 = shalt.err (%p4033_p3)  }

</bundles_post_ra>
